<compile_context>
chip_gen: v7x
topology: tpu7x:2x2x1
jax: 0.10.0
libtpu: 0.0.40
codegen_flags: <defaults>
</compile_context>

<pallas_src>
import functools
import math

import jax
import jax.numpy as jnp
from jax.experimental import pallas as pl
from jax.experimental.pallas import tpu as pltpu


# ----------------------------- small helpers -------------------------------
def _layernorm(x, w, b, eps=1e-5):
    mu = jnp.mean(x, axis=-1, keepdims=True)
    var = jnp.mean((x - mu) ** 2, axis=-1, keepdims=True)
    return (x - mu) * jax.lax.rsqrt(var + eps) * w + b


def _quick_gelu(x):
    return x * jax.nn.sigmoid(1.702 * x)


# --------------------------- fused forward kernel ---------------------------
def fused_cross_kernel(*refs, n_head, d_model, n_layers):
    dh = d_model // n_head
    scale = 1.0 / math.sqrt(dh)

    n_in = 3 + 12 * n_layers + 4
    x_ref, mask_ref, pos_ref = refs[0], refs[1], refs[2]
    layer_refs = refs[3:3 + 12 * n_layers]
    pool_lnw, pool_lnb, pool_wd, pool_bd = refs[3 + 12 * n_layers:n_in]
    emb_ref, pooled_ref = refs[n_in], refs[n_in + 1]

    # CrossEmbeddings: x + position_embeddings (dropout is identity in eval).
    x = x_ref[0] + pos_ref[...]                                   # (L, D)

    # build_attention_mask, computed once in-kernel from the raw (1, L) mask.
    amask = (1.0 - mask_ref[0]) * -1000000.0                      # (1, L)

    for li in range(n_layers):
        (ln1w, ln1b, wqkv, bqkv, wout, bout,
         ln2w, ln2b, wfc, bfc, wproj, bproj) = layer_refs[12 * li:12 * (li + 1)]

        # ---- attention branch ----
        h = _layernorm(x, ln1w[...], ln1b[...])
        qkv = jnp.dot(h, wqkv[...], preferred_element_type=jnp.float32) + bqkv[...]

        q = jnp.stack([qkv[:, hd * dh:(hd + 1) * dh]
                       for hd in range(n_head)], axis=0)          # (H, L, dh)
        k = jnp.stack([qkv[:, d_model + hd * dh:d_model + (hd + 1) * dh]
                       for hd in range(n_head)], axis=0)          # (H, L, dh)
        v = jnp.stack([qkv[:, 2 * d_model + hd * dh:2 * d_model + (hd + 1) * dh]
                       for hd in range(n_head)], axis=0)          # (H, L, dh)

        # all-head scores in one batched dot_general (no explicit k.T)
        s = jnp.einsum("hqd,hkd->hqk", q, k,
                       preferred_element_type=jnp.float32) * scale
        s = s + amask[None]                                       # (H, L, L)
        s = s - jnp.max(s, axis=-1, keepdims=True)
        p = jnp.exp(s)
        p = p * pl.reciprocal(jnp.sum(p, axis=-1, keepdims=True), approx=True)

        ho = jnp.einsum("hqk,hkd->hqd", p, v,
                        preferred_element_type=jnp.float32)       # (H, L, dh)
        cat = jnp.concatenate([ho[hd] for hd in range(n_head)], axis=-1)  # (L, D)
        attn_o = jnp.dot(cat, wout[...],
                         preferred_element_type=jnp.float32) + bout[...]
        x = x + attn_o

        # ---- MLP branch ----
        h2 = _layernorm(x, ln2w[...], ln2b[...])
        m1 = _quick_gelu(jnp.dot(h2, wfc[...],
                                 preferred_element_type=jnp.float32) + bfc[...])
        m2 = jnp.dot(m1, wproj[...],
                     preferred_element_type=jnp.float32) + bproj[...]
        x = x + m2

    emb_ref[0] = x

    # ---- pooler (LN + Linear + QuickGELU on token 0), fused in ----
    x0 = x[0:1, :]                                                # (1, D)
    hp = _layernorm(x0, pool_lnw[...], pool_lnb[...])
    pooled_ref[0] = _quick_gelu(
        jnp.dot(hp, pool_wd[...], preferred_element_type=jnp.float32)
        + pool_bd[...])


# ------------------------------ full forward --------------------------------
def cross_model_forward(concat_input, attention_mask, params, n_head):
    """Mirrors CrossModel.forward (dropout is identity in eval mode)."""
    B, L, D = concat_input.shape
    n_layers = len(params["layers"])

    pos = params["pos_emb"][:L]                                   # (L, D)
    mask3 = attention_mask.reshape(B, 1, L).astype(jnp.float32)   # raw 0/1 mask

    flat_params = [p for layer in params["layers"] for p in layer]
    flat_params = [pos] + flat_params + list(params["pooler"])

    def full_spec(arr):
        nd = arr.ndim
        return pl.BlockSpec(arr.shape, lambda b, _nd=nd: (0,) * _nd)

    kernel = functools.partial(fused_cross_kernel,
                               n_head=n_head, d_model=D, n_layers=n_layers)

    emb, pooled3 = pl.pallas_call(
        kernel,
        out_shape=(jax.ShapeDtypeStruct((B, L, D), concat_input.dtype),
                   jax.ShapeDtypeStruct((B, 1, D), concat_input.dtype)),
        grid=(B,),
        in_specs=[
            pl.BlockSpec((1, L, D), lambda b: (b, 0, 0)),          # x
            pl.BlockSpec((1, 1, L), lambda b: (b, 0, 0)),          # raw mask
            *[full_spec(p) for p in flat_params],                  # weights
        ],
        out_specs=(pl.BlockSpec((1, L, D), lambda b: (b, 0, 0)),
                   pl.BlockSpec((1, 1, D), lambda b: (b, 0, 0))),
        compiler_params=pltpu.CompilerParams(
            dimension_semantics=("parallel",)),
    )(concat_input, mask3, *flat_params)

    return emb, pooled3[:, 0, :]


# ------------------------- deterministic parameters --------------------------
def init_params(key, n_layers, d_model, max_pos):
    """init_weights: Linear/Embedding ~ N(0, 0.02), biases 0, LN weight=1 bias=0.
    Linear weights are stored pre-transposed as (in, out) so the kernel does x @ W."""
    def nrm(k, shape, std=0.02):
        return std * jax.random.normal(k, shape, dtype=jnp.float32)

    keys = jax.random.split(key, 6 * n_layers + 2)
    ki = iter(keys)

    params = {"pos_emb": nrm(next(ki), (max_pos, d_model)), "layers": [], "pooler": None}
    ones_d = jnp.ones((1, d_model), jnp.float32)
    zeros_d = jnp.zeros((1, d_model), jnp.float32)

    for _ in range(n_layers):
        layer = (
            ones_d, zeros_d,                                   # ln1 w, b
            nrm(next(ki), (d_model, 3 * d_model)),             # Wqkv (in, out)
            jnp.zeros((1, 3 * d_model), jnp.float32),          # bqkv
            nrm(next(ki), (d_model, d_model)),                 # Wout
            zeros_d,                                           # bout
            ones_d, zeros_d,                                   # ln2 w, b
            nrm(next(ki), (d_model, 4 * d_model)),             # W c_fc
            jnp.zeros((1, 4 * d_model), jnp.float32),          # b c_fc
            nrm(next(ki), (4 * d_model, d_model)),             # W c_proj
            zeros_d,                                           # b c_proj
        )
        params["layers"].append(layer)

    params["pooler"] = (
        ones_d, zeros_d,                                       # ln_pool w, b
        nrm(next(ki), (d_model, d_model)),                     # dense W
        zeros_d,                                               # dense b
    )
    return params


# ------------------------- pure-JAX reference (check) ------------------------
def reference_forward(concat_input, attention_mask, params, n_head):
    B, L, D = concat_input.shape
    dh = D // n_head
    ext = jnp.broadcast_to((1.0 - attention_mask)[:, None, :] * -1000000.0, (B, L, L))
    x = concat_input + params["pos_emb"][:L][None]
    for (ln1w, ln1b, wqkv, bqkv, wout, bout,
         ln2w, ln2b, wfc, bfc, wproj, bproj) in params["layers"]:
        h = _layernorm(x, ln1w, ln1b)
        qkv = h @ wqkv + bqkv
        q, k, v = qkv[..., :D], qkv[..., D:2 * D], qkv[..., 2 * D:]
        q = q.reshape(B, L, n_head, dh).transpose(0, 2, 1, 3)
        k = k.reshape(B, L, n_head, dh).transpose(0, 2, 1, 3)
        v = v.reshape(B, L, n_head, dh).transpose(0, 2, 1, 3)
        s = jnp.einsum("bhqd,bhkd->bhqk", q, k) / jnp.sqrt(float(dh)) + ext[:, None]
        p = jax.nn.softmax(s, axis=-1)
        a = jnp.einsum("bhqk,bhkd->bhqd", p, v).transpose(0, 2, 1, 3).reshape(B, L, D)
        x = x + a @ wout + bout
        h2 = _layernorm(x, ln2w, ln2b)
        x = x + _quick_gelu(h2 @ wfc + bfc) @ wproj + bproj
    lnw, lnb, wd, bd = params["pooler"]
    pooled = _quick_gelu(_layernorm(x[:, 0, :], lnw, lnb) @ wd + bd)
    return x, pooled


# ----------------------------------- main ------------------------------------
if __name__ == "__main__":
    # config: hidden_size=32, num_hidden_layers=2, num_attention_heads=4,
    #         max_position_embeddings=16 ; inputs: batch=2, seq=8
    B, L, D, H, N_LAYERS, MAX_POS = 2, 8, 32, 4, 2, 16

    root = jax.random.PRNGKey(0)
    k_in, k_params = jax.random.split(root)

    concat_input = jax.random.normal(k_in, (B, L, D), dtype=jnp.float32)
    attention_mask = jnp.ones((B, L), dtype=jnp.float32)
    attention_mask = attention_mask.at[1, L - 2:].set(0.0)   # exercise masking
    params = init_params(k_params, N_LAYERS, D, MAX_POS)

    emb_out, pooled_out = cross_model_forward(concat_input, attention_mask, params, H)
    jax.block_until_ready((emb_out, pooled_out))

    ref_emb, ref_pooled = reference_forward(concat_input, attention_mask, params, H)
    assert emb_out.shape == (B, L, D) and pooled_out.shape == (B, D)
    assert jnp.allclose(emb_out, ref_emb, atol=2e-3, rtol=2e-3), "encoded layers mismatch"
    assert jnp.allclose(pooled_out, ref_pooled, atol=2e-3, rtol=2e-3), "pooled output mismatch"

    print("KERNEL_OK")
</pallas_src>

<mosaic_0001>
module attributes {stable_mosaic.version = 11 : i64} {
  func.func @fused_cross_kernel(%arg0: i32, %arg1: memref<1x8x32xf32, #tpu.memory_space<vmem>>, %arg2: memref<1x1x8xf32, #tpu.memory_space<vmem>>, %arg3: memref<8x32xf32, #tpu.memory_space<vmem>>, %arg4: memref<1x32xf32, #tpu.memory_space<vmem>>, %arg5: memref<1x32xf32, #tpu.memory_space<vmem>>, %arg6: memref<32x96xf32, #tpu.memory_space<vmem>>, %arg7: memref<1x96xf32, #tpu.memory_space<vmem>>, %arg8: memref<32x32xf32, #tpu.memory_space<vmem>>, %arg9: memref<1x32xf32, #tpu.memory_space<vmem>>, %arg10: memref<1x32xf32, #tpu.memory_space<vmem>>, %arg11: memref<1x32xf32, #tpu.memory_space<vmem>>, %arg12: memref<32x128xf32, #tpu.memory_space<vmem>>, %arg13: memref<1x128xf32, #tpu.memory_space<vmem>>, %arg14: memref<128x32xf32, #tpu.memory_space<vmem>>, %arg15: memref<1x32xf32, #tpu.memory_space<vmem>>, %arg16: memref<1x32xf32, #tpu.memory_space<vmem>>, %arg17: memref<1x32xf32, #tpu.memory_space<vmem>>, %arg18: memref<32x96xf32, #tpu.memory_space<vmem>>, %arg19: memref<1x96xf32, #tpu.memory_space<vmem>>, %arg20: memref<32x32xf32, #tpu.memory_space<vmem>>, %arg21: memref<1x32xf32, #tpu.memory_space<vmem>>, %arg22: memref<1x32xf32, #tpu.memory_space<vmem>>, %arg23: memref<1x32xf32, #tpu.memory_space<vmem>>, %arg24: memref<32x128xf32, #tpu.memory_space<vmem>>, %arg25: memref<1x128xf32, #tpu.memory_space<vmem>>, %arg26: memref<128x32xf32, #tpu.memory_space<vmem>>, %arg27: memref<1x32xf32, #tpu.memory_space<vmem>>, %arg28: memref<1x32xf32, #tpu.memory_space<vmem>>, %arg29: memref<1x32xf32, #tpu.memory_space<vmem>>, %arg30: memref<32x32xf32, #tpu.memory_space<vmem>>, %arg31: memref<1x32xf32, #tpu.memory_space<vmem>>, %arg32: memref<1x8x32xf32, #tpu.memory_space<vmem>>, %arg33: memref<1x1x32xf32, #tpu.memory_space<vmem>>) attributes {dimension_semantics = [#tpu.dimension_semantics<parallel>], iteration_bounds = array<i64: 2>, scalar_prefetch = 0 : i64, scratch_operands = 0 : i64, tpu.core_type = #tpu.core_type<tc>, window_params = [{transform_indices = @transform_0, window_bounds = array<i64: 1, 8, 32>}, {transform_indices = @transform_1, window_bounds = array<i64: 1, 1, 8>}, {pipeline_mode = #tpu.pipeline_mode<synchronous>, transform_indices = @transform_2, window_bounds = array<i64: 8, 32>}, {pipeline_mode = #tpu.pipeline_mode<synchronous>, transform_indices = @transform_3, window_bounds = array<i64: 1, 32>}, {pipeline_mode = #tpu.pipeline_mode<synchronous>, transform_indices = @transform_4, window_bounds = array<i64: 1, 32>}, {pipeline_mode = #tpu.pipeline_mode<synchronous>, transform_indices = @transform_5, window_bounds = array<i64: 32, 96>}, {pipeline_mode = #tpu.pipeline_mode<synchronous>, transform_indices = @transform_6, window_bounds = array<i64: 1, 96>}, {pipeline_mode = #tpu.pipeline_mode<synchronous>, transform_indices = @transform_7, window_bounds = array<i64: 32, 32>}, {pipeline_mode = #tpu.pipeline_mode<synchronous>, transform_indices = @transform_8, window_bounds = array<i64: 1, 32>}, {pipeline_mode = #tpu.pipeline_mode<synchronous>, transform_indices = @transform_9, window_bounds = array<i64: 1, 32>}, {pipeline_mode = #tpu.pipeline_mode<synchronous>, transform_indices = @transform_10, window_bounds = array<i64: 1, 32>}, {pipeline_mode = #tpu.pipeline_mode<synchronous>, transform_indices = @transform_11, window_bounds = array<i64: 32, 128>}, {pipeline_mode = #tpu.pipeline_mode<synchronous>, transform_indices = @transform_12, window_bounds = array<i64: 1, 128>}, {pipeline_mode = #tpu.pipeline_mode<synchronous>, transform_indices = @transform_13, window_bounds = array<i64: 128, 32>}, {pipeline_mode = #tpu.pipeline_mode<synchronous>, transform_indices = @transform_14, window_bounds = array<i64: 1, 32>}, {pipeline_mode = #tpu.pipeline_mode<synchronous>, transform_indices = @transform_15, window_bounds = array<i64: 1, 32>}, {pipeline_mode = #tpu.pipeline_mode<synchronous>, transform_indices = @transform_16, window_bounds = array<i64: 1, 32>}, {pipeline_mode = #tpu.pipeline_mode<synchronous>, transform_indices = @transform_17, window_bounds = array<i64: 32, 96>}, {pipeline_mode = #tpu.pipeline_mode<synchronous>, transform_indices = @transform_18, window_bounds = array<i64: 1, 96>}, {pipeline_mode = #tpu.pipeline_mode<synchronous>, transform_indices = @transform_19, window_bounds = array<i64: 32, 32>}, {pipeline_mode = #tpu.pipeline_mode<synchronous>, transform_indices = @transform_20, window_bounds = array<i64: 1, 32>}, {pipeline_mode = #tpu.pipeline_mode<synchronous>, transform_indices = @transform_21, window_bounds = array<i64: 1, 32>}, {pipeline_mode = #tpu.pipeline_mode<synchronous>, transform_indices = @transform_22, window_bounds = array<i64: 1, 32>}, {pipeline_mode = #tpu.pipeline_mode<synchronous>, transform_indices = @transform_23, window_bounds = array<i64: 32, 128>}, {pipeline_mode = #tpu.pipeline_mode<synchronous>, transform_indices = @transform_24, window_bounds = array<i64: 1, 128>}, {pipeline_mode = #tpu.pipeline_mode<synchronous>, transform_indices = @transform_25, window_bounds = array<i64: 128, 32>}, {pipeline_mode = #tpu.pipeline_mode<synchronous>, transform_indices = @transform_26, window_bounds = array<i64: 1, 32>}, {pipeline_mode = #tpu.pipeline_mode<synchronous>, transform_indices = @transform_27, window_bounds = array<i64: 1, 32>}, {pipeline_mode = #tpu.pipeline_mode<synchronous>, transform_indices = @transform_28, window_bounds = array<i64: 1, 32>}, {pipeline_mode = #tpu.pipeline_mode<synchronous>, transform_indices = @transform_29, window_bounds = array<i64: 32, 32>}, {pipeline_mode = #tpu.pipeline_mode<synchronous>, transform_indices = @transform_30, window_bounds = array<i64: 1, 32>}, {transform_indices = @transform_31, window_bounds = array<i64: 1, 8, 32>}, {transform_indices = @transform_32, window_bounds = array<i64: 1, 1, 32>}]} {
    %c0 = arith.constant 0 : index
    %c0_0 = arith.constant 0 : index
    %c0_1 = arith.constant 0 : index
    %0 = vector.load %arg1[%c0, %c0_0, %c0_1] : memref<1x8x32xf32, #tpu.memory_space<vmem>>, vector<1x8x32xf32>
    %1 = vector.shape_cast %0 : vector<1x8x32xf32> to vector<8x32xf32>
    %c0_2 = arith.constant 0 : index
    %c0_3 = arith.constant 0 : index
    %2 = vector.load %arg3[%c0_2, %c0_3] : memref<8x32xf32, #tpu.memory_space<vmem>>, vector<8x32xf32>
    %3 = arith.addf %1, %2 : vector<8x32xf32>
    %c0_4 = arith.constant 0 : index
    %c0_5 = arith.constant 0 : index
    %c0_6 = arith.constant 0 : index
    %4 = vector.load %arg2[%c0_4, %c0_5, %c0_6] : memref<1x1x8xf32, #tpu.memory_space<vmem>>, vector<1x1x8xf32>
    %5 = vector.shape_cast %4 : vector<1x1x8xf32> to vector<1x8xf32>
    %cst = arith.constant 1.000000e+00 : f32
    %6 = vector.broadcast %cst : f32 to vector<1x8xf32>
    %7 = arith.subf %6, %5 : vector<1x8xf32>
    %cst_7 = arith.constant -1.000000e+06 : f32
    %8 = vector.broadcast %cst_7 : f32 to vector<1x8xf32>
    %9 = arith.mulf %7, %8 : vector<1x8xf32>
    %c0_8 = arith.constant 0 : index
    %c0_9 = arith.constant 0 : index
    %10 = vector.load %arg4[%c0_8, %c0_9] : memref<1x32xf32, #tpu.memory_space<vmem>>, vector<1x32xf32>
    %c0_10 = arith.constant 0 : index
    %c0_11 = arith.constant 0 : index
    %11 = vector.load %arg5[%c0_10, %c0_11] : memref<1x32xf32, #tpu.memory_space<vmem>>, vector<1x32xf32>
    %cst_12 = arith.constant dense<0.000000e+00> : vector<8xf32>
    %12 = vector.multi_reduction <add>, %3, %cst_12 [1] : vector<8x32xf32> to vector<8xf32>
    %13 = vector.shape_cast %12 : vector<8xf32> to vector<8x1xf32>
    %cst_13 = arith.constant 3.200000e+01 : f32
    %14 = vector.broadcast %cst_13 : f32 to vector<8x1xf32>
    %15 = arith.divf %13, %14 : vector<8x1xf32>
    %16 = vector.broadcast %15 : vector<8x1xf32> to vector<8x32xf32>
    %17 = arith.subf %3, %16 : vector<8x32xf32>
    %18 = arith.mulf %17, %17 : vector<8x32xf32>
    %cst_14 = arith.constant dense<0.000000e+00> : vector<8xf32>
    %19 = vector.multi_reduction <add>, %18, %cst_14 [1] : vector<8x32xf32> to vector<8xf32>
    %20 = vector.shape_cast %19 : vector<8xf32> to vector<8x1xf32>
    %cst_15 = arith.constant 3.200000e+01 : f32
    %21 = vector.broadcast %cst_15 : f32 to vector<8x1xf32>
    %22 = arith.divf %20, %21 : vector<8x1xf32>
    %23 = vector.broadcast %15 : vector<8x1xf32> to vector<8x32xf32>
    %24 = arith.subf %3, %23 : vector<8x32xf32>
    %cst_16 = arith.constant 9.99999974E-6 : f32
    %25 = vector.broadcast %cst_16 : f32 to vector<8x1xf32>
    %26 = arith.addf %22, %25 : vector<8x1xf32>
    %27 = math.rsqrt %26 : vector<8x1xf32>
    %28 = vector.broadcast %27 : vector<8x1xf32> to vector<8x32xf32>
    %29 = arith.mulf %24, %28 : vector<8x32xf32>
    %30 = vector.broadcast %10 : vector<1x32xf32> to vector<8x32xf32>
    %31 = arith.mulf %29, %30 : vector<8x32xf32>
    %32 = vector.broadcast %11 : vector<1x32xf32> to vector<8x32xf32>
    %33 = arith.addf %31, %32 : vector<8x32xf32>
    %c0_17 = arith.constant 0 : index
    %c0_18 = arith.constant 0 : index
    %34 = vector.load %arg6[%c0_17, %c0_18] : memref<32x96xf32, #tpu.memory_space<vmem>>, vector<32x96xf32>
    %cst_19 = arith.constant dense<0.000000e+00> : vector<8x96xf32>
    %35 = tpu.matmul %33, %34, %cst_19 {dimension_numbers = #tpu.dot_dimension_numbers<[1], [0], [0], [1], [0, 0, 1, 1], [], []>} : vector<8x32xf32>, vector<32x96xf32>, vector<8x96xf32> -> vector<8x96xf32>
    %c0_20 = arith.constant 0 : index
    %c0_21 = arith.constant 0 : index
    %36 = vector.load %arg7[%c0_20, %c0_21] : memref<1x96xf32, #tpu.memory_space<vmem>>, vector<1x96xf32>
    %37 = vector.broadcast %36 : vector<1x96xf32> to vector<8x96xf32>
    %38 = arith.addf %35, %37 : vector<8x96xf32>
    %39 = vector.extract_strided_slice %38 {offsets = [0, 0], sizes = [8, 8], strides = [1, 1]} : vector<8x96xf32> to vector<8x8xf32>
    %40 = vector.extract_strided_slice %38 {offsets = [0, 8], sizes = [8, 8], strides = [1, 1]} : vector<8x96xf32> to vector<8x8xf32>
    %41 = vector.extract_strided_slice %38 {offsets = [0, 16], sizes = [8, 8], strides = [1, 1]} : vector<8x96xf32> to vector<8x8xf32>
    %42 = vector.extract_strided_slice %38 {offsets = [0, 24], sizes = [8, 8], strides = [1, 1]} : vector<8x96xf32> to vector<8x8xf32>
    %43 = vector.shape_cast %39 : vector<8x8xf32> to vector<1x8x8xf32>
    %44 = vector.shape_cast %40 : vector<8x8xf32> to vector<1x8x8xf32>
    %45 = vector.shape_cast %41 : vector<8x8xf32> to vector<1x8x8xf32>
    %46 = vector.shape_cast %42 : vector<8x8xf32> to vector<1x8x8xf32>
    %47 = tpu.concatenate %43, %44, %45, %46 in 0 : vector<1x8x8xf32>, vector<1x8x8xf32>, vector<1x8x8xf32>, vector<1x8x8xf32> -> vector<4x8x8xf32>
    %48 = vector.extract_strided_slice %38 {offsets = [0, 32], sizes = [8, 8], strides = [1, 1]} : vector<8x96xf32> to vector<8x8xf32>
    %49 = vector.extract_strided_slice %38 {offsets = [0, 40], sizes = [8, 8], strides = [1, 1]} : vector<8x96xf32> to vector<8x8xf32>
    %50 = vector.extract_strided_slice %38 {offsets = [0, 48], sizes = [8, 8], strides = [1, 1]} : vector<8x96xf32> to vector<8x8xf32>
    %51 = vector.extract_strided_slice %38 {offsets = [0, 56], sizes = [8, 8], strides = [1, 1]} : vector<8x96xf32> to vector<8x8xf32>
    %52 = vector.shape_cast %48 : vector<8x8xf32> to vector<1x8x8xf32>
    %53 = vector.shape_cast %49 : vector<8x8xf32> to vector<1x8x8xf32>
    %54 = vector.shape_cast %50 : vector<8x8xf32> to vector<1x8x8xf32>
    %55 = vector.shape_cast %51 : vector<8x8xf32> to vector<1x8x8xf32>
    %56 = tpu.concatenate %52, %53, %54, %55 in 0 : vector<1x8x8xf32>, vector<1x8x8xf32>, vector<1x8x8xf32>, vector<1x8x8xf32> -> vector<4x8x8xf32>
    %57 = vector.extract_strided_slice %38 {offsets = [0, 64], sizes = [8, 8], strides = [1, 1]} : vector<8x96xf32> to vector<8x8xf32>
    %58 = vector.extract_strided_slice %38 {offsets = [0, 72], sizes = [8, 8], strides = [1, 1]} : vector<8x96xf32> to vector<8x8xf32>
    %59 = vector.extract_strided_slice %38 {offsets = [0, 80], sizes = [8, 8], strides = [1, 1]} : vector<8x96xf32> to vector<8x8xf32>
    %60 = vector.extract_strided_slice %38 {offsets = [0, 88], sizes = [8, 8], strides = [1, 1]} : vector<8x96xf32> to vector<8x8xf32>
    %61 = vector.shape_cast %57 : vector<8x8xf32> to vector<1x8x8xf32>
    %62 = vector.shape_cast %58 : vector<8x8xf32> to vector<1x8x8xf32>
    %63 = vector.shape_cast %59 : vector<8x8xf32> to vector<1x8x8xf32>
    %64 = vector.shape_cast %60 : vector<8x8xf32> to vector<1x8x8xf32>
    %65 = tpu.concatenate %61, %62, %63, %64 in 0 : vector<1x8x8xf32>, vector<1x8x8xf32>, vector<1x8x8xf32>, vector<1x8x8xf32> -> vector<4x8x8xf32>
    "tpu.trace_start"() <{level = 10 : i32, message = "hqd,hkd->hqk"}> : () -> ()
    %cst_22 = arith.constant dense<0.000000e+00> : vector<4x8x8xf32>
    %66 = tpu.matmul %47, %56, %cst_22 {dimension_numbers = #tpu.dot_dimension_numbers<[2], [2], [1], [1], [0, 0, 0, 1, 1, 1], [0], [0]>} : vector<4x8x8xf32>, vector<4x8x8xf32>, vector<4x8x8xf32> -> vector<4x8x8xf32>
    "tpu.trace_stop"() : () -> ()
    %cst_23 = arith.constant 0.353553385 : f32
    %67 = vector.broadcast %cst_23 : f32 to vector<4x8x8xf32>
    %68 = arith.mulf %66, %67 : vector<4x8x8xf32>
    %69 = vector.shape_cast %9 : vector<1x8xf32> to vector<1x1x8xf32>
    %70 = vector.broadcast %69 : vector<1x1x8xf32> to vector<4x8x8xf32>
    %71 = arith.addf %68, %70 : vector<4x8x8xf32>
    %cst_24 = arith.constant dense<0xFF800000> : vector<4x8xf32>
    %72 = vector.multi_reduction <maximumf>, %71, %cst_24 [2] : vector<4x8x8xf32> to vector<4x8xf32>
    %73 = vector.shape_cast %72 : vector<4x8xf32> to vector<4x8x1xf32>
    %74 = vector.broadcast %73 : vector<4x8x1xf32> to vector<4x8x8xf32>
    %75 = arith.subf %71, %74 : vector<4x8x8xf32>
    %76 = math.exp %75 : vector<4x8x8xf32>
    %cst_25 = arith.constant dense<0.000000e+00> : vector<4x8xf32>
    %77 = vector.multi_reduction <add>, %76, %cst_25 [2] : vector<4x8x8xf32> to vector<4x8xf32>
    %78 = vector.shape_cast %77 : vector<4x8xf32> to vector<4x8x1xf32>
    %79 = tpu.reciprocal %78 {approx = true} : vector<4x8x1xf32> -> vector<4x8x1xf32>
    %80 = vector.broadcast %79 : vector<4x8x1xf32> to vector<4x8x8xf32>
    %81 = arith.mulf %76, %80 : vector<4x8x8xf32>
    "tpu.trace_start"() <{level = 10 : i32, message = "hqk,hkd->hqd"}> : () -> ()
    %cst_26 = arith.constant dense<0.000000e+00> : vector<4x8x8xf32>
    %82 = tpu.matmul %81, %65, %cst_26 {dimension_numbers = #tpu.dot_dimension_numbers<[2], [1], [1], [2], [0, 0, 0, 1, 1, 2], [0], [0]>} : vector<4x8x8xf32>, vector<4x8x8xf32>, vector<4x8x8xf32> -> vector<4x8x8xf32>
    "tpu.trace_stop"() : () -> ()
    %83 = vector.extract_strided_slice %82 {offsets = [0, 0, 0], sizes = [1, 8, 8], strides = [1, 1, 1]} : vector<4x8x8xf32> to vector<1x8x8xf32>
    %84 = vector.shape_cast %83 : vector<1x8x8xf32> to vector<8x8xf32>
    %85 = vector.extract_strided_slice %82 {offsets = [1, 0, 0], sizes = [1, 8, 8], strides = [1, 1, 1]} : vector<4x8x8xf32> to vector<1x8x8xf32>
    %86 = vector.shape_cast %85 : vector<1x8x8xf32> to vector<8x8xf32>
    %87 = vector.extract_strided_slice %82 {offsets = [2, 0, 0], sizes = [1, 8, 8], strides = [1, 1, 1]} : vector<4x8x8xf32> to vector<1x8x8xf32>
    %88 = vector.shape_cast %87 : vector<1x8x8xf32> to vector<8x8xf32>
    %89 = vector.extract_strided_slice %82 {offsets = [3, 0, 0], sizes = [1, 8, 8], strides = [1, 1, 1]} : vector<4x8x8xf32> to vector<1x8x8xf32>
    %90 = vector.shape_cast %89 : vector<1x8x8xf32> to vector<8x8xf32>
    %91 = tpu.concatenate %84, %86, %88, %90 in 1 : vector<8x8xf32>, vector<8x8xf32>, vector<8x8xf32>, vector<8x8xf32> -> vector<8x32xf32>
    %c0_27 = arith.constant 0 : index
    %c0_28 = arith.constant 0 : index
    %92 = vector.load %arg8[%c0_27, %c0_28] : memref<32x32xf32, #tpu.memory_space<vmem>>, vector<32x32xf32>
    %cst_29 = arith.constant dense<0.000000e+00> : vector<8x32xf32>
    %93 = tpu.matmul %91, %92, %cst_29 {dimension_numbers = #tpu.dot_dimension_numbers<[1], [0], [0], [1], [0, 0, 1, 1], [], []>} : vector<8x32xf32>, vector<32x32xf32>, vector<8x32xf32> -> vector<8x32xf32>
    %c0_30 = arith.constant 0 : index
    %c0_31 = arith.constant 0 : index
    %94 = vector.load %arg9[%c0_30, %c0_31] : memref<1x32xf32, #tpu.memory_space<vmem>>, vector<1x32xf32>
    %95 = vector.broadcast %94 : vector<1x32xf32> to vector<8x32xf32>
    %96 = arith.addf %93, %95 : vector<8x32xf32>
    %97 = arith.addf %3, %96 : vector<8x32xf32>
    %c0_32 = arith.constant 0 : index
    %c0_33 = arith.constant 0 : index
    %98 = vector.load %arg10[%c0_32, %c0_33] : memref<1x32xf32, #tpu.memory_space<vmem>>, vector<1x32xf32>
    %c0_34 = arith.constant 0 : index
    %c0_35 = arith.constant 0 : index
    %99 = vector.load %arg11[%c0_34, %c0_35] : memref<1x32xf32, #tpu.memory_space<vmem>>, vector<1x32xf32>
    %cst_36 = arith.constant dense<0.000000e+00> : vector<8xf32>
    %100 = vector.multi_reduction <add>, %97, %cst_36 [1] : vector<8x32xf32> to vector<8xf32>
    %101 = vector.shape_cast %100 : vector<8xf32> to vector<8x1xf32>
    %cst_37 = arith.constant 3.200000e+01 : f32
    %102 = vector.broadcast %cst_37 : f32 to vector<8x1xf32>
    %103 = arith.divf %101, %102 : vector<8x1xf32>
    %104 = vector.broadcast %103 : vector<8x1xf32> to vector<8x32xf32>
    %105 = arith.subf %97, %104 : vector<8x32xf32>
    %106 = arith.mulf %105, %105 : vector<8x32xf32>
    %cst_38 = arith.constant dense<0.000000e+00> : vector<8xf32>
    %107 = vector.multi_reduction <add>, %106, %cst_38 [1] : vector<8x32xf32> to vector<8xf32>
    %108 = vector.shape_cast %107 : vector<8xf32> to vector<8x1xf32>
    %cst_39 = arith.constant 3.200000e+01 : f32
    %109 = vector.broadcast %cst_39 : f32 to vector<8x1xf32>
    %110 = arith.divf %108, %109 : vector<8x1xf32>
    %111 = vector.broadcast %103 : vector<8x1xf32> to vector<8x32xf32>
    %112 = arith.subf %97, %111 : vector<8x32xf32>
    %cst_40 = arith.constant 9.99999974E-6 : f32
    %113 = vector.broadcast %cst_40 : f32 to vector<8x1xf32>
    %114 = arith.addf %110, %113 : vector<8x1xf32>
    %115 = math.rsqrt %114 : vector<8x1xf32>
    %116 = vector.broadcast %115 : vector<8x1xf32> to vector<8x32xf32>
    %117 = arith.mulf %112, %116 : vector<8x32xf32>
    %118 = vector.broadcast %98 : vector<1x32xf32> to vector<8x32xf32>
    %119 = arith.mulf %117, %118 : vector<8x32xf32>
    %120 = vector.broadcast %99 : vector<1x32xf32> to vector<8x32xf32>
    %121 = arith.addf %119, %120 : vector<8x32xf32>
    %c0_41 = arith.constant 0 : index
    %c0_42 = arith.constant 0 : index
    %122 = vector.load %arg12[%c0_41, %c0_42] : memref<32x128xf32, #tpu.memory_space<vmem>>, vector<32x128xf32>
    %cst_43 = arith.constant dense<0.000000e+00> : vector<8x128xf32>
    %123 = tpu.matmul %121, %122, %cst_43 {dimension_numbers = #tpu.dot_dimension_numbers<[1], [0], [0], [1], [0, 0, 1, 1], [], []>} : vector<8x32xf32>, vector<32x128xf32>, vector<8x128xf32> -> vector<8x128xf32>
    %c0_44 = arith.constant 0 : index
    %c0_45 = arith.constant 0 : index
    %124 = vector.load %arg13[%c0_44, %c0_45] : memref<1x128xf32, #tpu.memory_space<vmem>>, vector<1x128xf32>
    %125 = vector.broadcast %124 : vector<1x128xf32> to vector<8x128xf32>
    %126 = arith.addf %123, %125 : vector<8x128xf32>
    %cst_46 = arith.constant 1.702000e+00 : f32
    %127 = vector.broadcast %cst_46 : f32 to vector<8x128xf32>
    %128 = arith.mulf %127, %126 : vector<8x128xf32>
    %129 = arith.negf %128 : vector<8x128xf32>
    %130 = math.exp %129 : vector<8x128xf32>
    %cst_47 = arith.constant 1.000000e+00 : f32
    %131 = vector.broadcast %cst_47 : f32 to vector<8x128xf32>
    %132 = arith.addf %131, %130 : vector<8x128xf32>
    %133 = arith.divf %131, %132 : vector<8x128xf32>
    %134 = arith.mulf %126, %133 : vector<8x128xf32>
    %c0_48 = arith.constant 0 : index
    %c0_49 = arith.constant 0 : index
    %135 = vector.load %arg14[%c0_48, %c0_49] : memref<128x32xf32, #tpu.memory_space<vmem>>, vector<128x32xf32>
    %cst_50 = arith.constant dense<0.000000e+00> : vector<8x32xf32>
    %136 = tpu.matmul %134, %135, %cst_50 {dimension_numbers = #tpu.dot_dimension_numbers<[1], [0], [0], [1], [0, 0, 1, 1], [], []>} : vector<8x128xf32>, vector<128x32xf32>, vector<8x32xf32> -> vector<8x32xf32>
    %c0_51 = arith.constant 0 : index
    %c0_52 = arith.constant 0 : index
    %137 = vector.load %arg15[%c0_51, %c0_52] : memref<1x32xf32, #tpu.memory_space<vmem>>, vector<1x32xf32>
    %138 = vector.broadcast %137 : vector<1x32xf32> to vector<8x32xf32>
    %139 = arith.addf %136, %138 : vector<8x32xf32>
    %140 = arith.addf %97, %139 : vector<8x32xf32>
    %c0_53 = arith.constant 0 : index
    %c0_54 = arith.constant 0 : index
    %141 = vector.load %arg16[%c0_53, %c0_54] : memref<1x32xf32, #tpu.memory_space<vmem>>, vector<1x32xf32>
    %c0_55 = arith.constant 0 : index
    %c0_56 = arith.constant 0 : index
    %142 = vector.load %arg17[%c0_55, %c0_56] : memref<1x32xf32, #tpu.memory_space<vmem>>, vector<1x32xf32>
    %cst_57 = arith.constant dense<0.000000e+00> : vector<8xf32>
    %143 = vector.multi_reduction <add>, %140, %cst_57 [1] : vector<8x32xf32> to vector<8xf32>
    %144 = vector.shape_cast %143 : vector<8xf32> to vector<8x1xf32>
    %cst_58 = arith.constant 3.200000e+01 : f32
    %145 = vector.broadcast %cst_58 : f32 to vector<8x1xf32>
    %146 = arith.divf %144, %145 : vector<8x1xf32>
    %147 = vector.broadcast %146 : vector<8x1xf32> to vector<8x32xf32>
    %148 = arith.subf %140, %147 : vector<8x32xf32>
    %149 = arith.mulf %148, %148 : vector<8x32xf32>
    %cst_59 = arith.constant dense<0.000000e+00> : vector<8xf32>
    %150 = vector.multi_reduction <add>, %149, %cst_59 [1] : vector<8x32xf32> to vector<8xf32>
    %151 = vector.shape_cast %150 : vector<8xf32> to vector<8x1xf32>
    %cst_60 = arith.constant 3.200000e+01 : f32
    %152 = vector.broadcast %cst_60 : f32 to vector<8x1xf32>
    %153 = arith.divf %151, %152 : vector<8x1xf32>
    %154 = vector.broadcast %146 : vector<8x1xf32> to vector<8x32xf32>
    %155 = arith.subf %140, %154 : vector<8x32xf32>
    %cst_61 = arith.constant 9.99999974E-6 : f32
    %156 = vector.broadcast %cst_61 : f32 to vector<8x1xf32>
    %157 = arith.addf %153, %156 : vector<8x1xf32>
    %158 = math.rsqrt %157 : vector<8x1xf32>
    %159 = vector.broadcast %158 : vector<8x1xf32> to vector<8x32xf32>
    %160 = arith.mulf %155, %159 : vector<8x32xf32>
    %161 = vector.broadcast %141 : vector<1x32xf32> to vector<8x32xf32>
    %162 = arith.mulf %160, %161 : vector<8x32xf32>
    %163 = vector.broadcast %142 : vector<1x32xf32> to vector<8x32xf32>
    %164 = arith.addf %162, %163 : vector<8x32xf32>
    %c0_62 = arith.constant 0 : index
    %c0_63 = arith.constant 0 : index
    %165 = vector.load %arg18[%c0_62, %c0_63] : memref<32x96xf32, #tpu.memory_space<vmem>>, vector<32x96xf32>
    %cst_64 = arith.constant dense<0.000000e+00> : vector<8x96xf32>
    %166 = tpu.matmul %164, %165, %cst_64 {dimension_numbers = #tpu.dot_dimension_numbers<[1], [0], [0], [1], [0, 0, 1, 1], [], []>} : vector<8x32xf32>, vector<32x96xf32>, vector<8x96xf32> -> vector<8x96xf32>
    %c0_65 = arith.constant 0 : index
    %c0_66 = arith.constant 0 : index
    %167 = vector.load %arg19[%c0_65, %c0_66] : memref<1x96xf32, #tpu.memory_space<vmem>>, vector<1x96xf32>
    %168 = vector.broadcast %167 : vector<1x96xf32> to vector<8x96xf32>
    %169 = arith.addf %166, %168 : vector<8x96xf32>
    %170 = vector.extract_strided_slice %169 {offsets = [0, 0], sizes = [8, 8], strides = [1, 1]} : vector<8x96xf32> to vector<8x8xf32>
    %171 = vector.extract_strided_slice %169 {offsets = [0, 8], sizes = [8, 8], strides = [1, 1]} : vector<8x96xf32> to vector<8x8xf32>
    %172 = vector.extract_strided_slice %169 {offsets = [0, 16], sizes = [8, 8], strides = [1, 1]} : vector<8x96xf32> to vector<8x8xf32>
    %173 = vector.extract_strided_slice %169 {offsets = [0, 24], sizes = [8, 8], strides = [1, 1]} : vector<8x96xf32> to vector<8x8xf32>
    %174 = vector.shape_cast %170 : vector<8x8xf32> to vector<1x8x8xf32>
    %175 = vector.shape_cast %171 : vector<8x8xf32> to vector<1x8x8xf32>
    %176 = vector.shape_cast %172 : vector<8x8xf32> to vector<1x8x8xf32>
    %177 = vector.shape_cast %173 : vector<8x8xf32> to vector<1x8x8xf32>
    %178 = tpu.concatenate %174, %175, %176, %177 in 0 : vector<1x8x8xf32>, vector<1x8x8xf32>, vector<1x8x8xf32>, vector<1x8x8xf32> -> vector<4x8x8xf32>
    %179 = vector.extract_strided_slice %169 {offsets = [0, 32], sizes = [8, 8], strides = [1, 1]} : vector<8x96xf32> to vector<8x8xf32>
    %180 = vector.extract_strided_slice %169 {offsets = [0, 40], sizes = [8, 8], strides = [1, 1]} : vector<8x96xf32> to vector<8x8xf32>
    %181 = vector.extract_strided_slice %169 {offsets = [0, 48], sizes = [8, 8], strides = [1, 1]} : vector<8x96xf32> to vector<8x8xf32>
    %182 = vector.extract_strided_slice %169 {offsets = [0, 56], sizes = [8, 8], strides = [1, 1]} : vector<8x96xf32> to vector<8x8xf32>
    %183 = vector.shape_cast %179 : vector<8x8xf32> to vector<1x8x8xf32>
    %184 = vector.shape_cast %180 : vector<8x8xf32> to vector<1x8x8xf32>
    %185 = vector.shape_cast %181 : vector<8x8xf32> to vector<1x8x8xf32>
    %186 = vector.shape_cast %182 : vector<8x8xf32> to vector<1x8x8xf32>
    %187 = tpu.concatenate %183, %184, %185, %186 in 0 : vector<1x8x8xf32>, vector<1x8x8xf32>, vector<1x8x8xf32>, vector<1x8x8xf32> -> vector<4x8x8xf32>
    %188 = vector.extract_strided_slice %169 {offsets = [0, 64], sizes = [8, 8], strides = [1, 1]} : vector<8x96xf32> to vector<8x8xf32>
    %189 = vector.extract_strided_slice %169 {offsets = [0, 72], sizes = [8, 8], strides = [1, 1]} : vector<8x96xf32> to vector<8x8xf32>
    %190 = vector.extract_strided_slice %169 {offsets = [0, 80], sizes = [8, 8], strides = [1, 1]} : vector<8x96xf32> to vector<8x8xf32>
    %191 = vector.extract_strided_slice %169 {offsets = [0, 88], sizes = [8, 8], strides = [1, 1]} : vector<8x96xf32> to vector<8x8xf32>
    %192 = vector.shape_cast %188 : vector<8x8xf32> to vector<1x8x8xf32>
    %193 = vector.shape_cast %189 : vector<8x8xf32> to vector<1x8x8xf32>
    %194 = vector.shape_cast %190 : vector<8x8xf32> to vector<1x8x8xf32>
    %195 = vector.shape_cast %191 : vector<8x8xf32> to vector<1x8x8xf32>
    %196 = tpu.concatenate %192, %193, %194, %195 in 0 : vector<1x8x8xf32>, vector<1x8x8xf32>, vector<1x8x8xf32>, vector<1x8x8xf32> -> vector<4x8x8xf32>
    "tpu.trace_start"() <{level = 10 : i32, message = "hqd,hkd->hqk"}> : () -> ()
    %cst_67 = arith.constant dense<0.000000e+00> : vector<4x8x8xf32>
    %197 = tpu.matmul %178, %187, %cst_67 {dimension_numbers = #tpu.dot_dimension_numbers<[2], [2], [1], [1], [0, 0, 0, 1, 1, 1], [0], [0]>} : vector<4x8x8xf32>, vector<4x8x8xf32>, vector<4x8x8xf32> -> vector<4x8x8xf32>
    "tpu.trace_stop"() : () -> ()
    %cst_68 = arith.constant 0.353553385 : f32
    %198 = vector.broadcast %cst_68 : f32 to vector<4x8x8xf32>
    %199 = arith.mulf %197, %198 : vector<4x8x8xf32>
    %200 = vector.shape_cast %9 : vector<1x8xf32> to vector<1x1x8xf32>
    %201 = vector.broadcast %200 : vector<1x1x8xf32> to vector<4x8x8xf32>
    %202 = arith.addf %199, %201 : vector<4x8x8xf32>
    %cst_69 = arith.constant dense<0xFF800000> : vector<4x8xf32>
    %203 = vector.multi_reduction <maximumf>, %202, %cst_69 [2] : vector<4x8x8xf32> to vector<4x8xf32>
    %204 = vector.shape_cast %203 : vector<4x8xf32> to vector<4x8x1xf32>
    %205 = vector.broadcast %204 : vector<4x8x1xf32> to vector<4x8x8xf32>
    %206 = arith.subf %202, %205 : vector<4x8x8xf32>
    %207 = math.exp %206 : vector<4x8x8xf32>
    %cst_70 = arith.constant dense<0.000000e+00> : vector<4x8xf32>
    %208 = vector.multi_reduction <add>, %207, %cst_70 [2] : vector<4x8x8xf32> to vector<4x8xf32>
    %209 = vector.shape_cast %208 : vector<4x8xf32> to vector<4x8x1xf32>
    %210 = tpu.reciprocal %209 {approx = true} : vector<4x8x1xf32> -> vector<4x8x1xf32>
    %211 = vector.broadcast %210 : vector<4x8x1xf32> to vector<4x8x8xf32>
    %212 = arith.mulf %207, %211 : vector<4x8x8xf32>
    "tpu.trace_start"() <{level = 10 : i32, message = "hqk,hkd->hqd"}> : () -> ()
    %cst_71 = arith.constant dense<0.000000e+00> : vector<4x8x8xf32>
    %213 = tpu.matmul %212, %196, %cst_71 {dimension_numbers = #tpu.dot_dimension_numbers<[2], [1], [1], [2], [0, 0, 0, 1, 1, 2], [0], [0]>} : vector<4x8x8xf32>, vector<4x8x8xf32>, vector<4x8x8xf32> -> vector<4x8x8xf32>
    "tpu.trace_stop"() : () -> ()
    %214 = vector.extract_strided_slice %213 {offsets = [0, 0, 0], sizes = [1, 8, 8], strides = [1, 1, 1]} : vector<4x8x8xf32> to vector<1x8x8xf32>
    %215 = vector.shape_cast %214 : vector<1x8x8xf32> to vector<8x8xf32>
    %216 = vector.extract_strided_slice %213 {offsets = [1, 0, 0], sizes = [1, 8, 8], strides = [1, 1, 1]} : vector<4x8x8xf32> to vector<1x8x8xf32>
    %217 = vector.shape_cast %216 : vector<1x8x8xf32> to vector<8x8xf32>
    %218 = vector.extract_strided_slice %213 {offsets = [2, 0, 0], sizes = [1, 8, 8], strides = [1, 1, 1]} : vector<4x8x8xf32> to vector<1x8x8xf32>
    %219 = vector.shape_cast %218 : vector<1x8x8xf32> to vector<8x8xf32>
    %220 = vector.extract_strided_slice %213 {offsets = [3, 0, 0], sizes = [1, 8, 8], strides = [1, 1, 1]} : vector<4x8x8xf32> to vector<1x8x8xf32>
    %221 = vector.shape_cast %220 : vector<1x8x8xf32> to vector<8x8xf32>
    %222 = tpu.concatenate %215, %217, %219, %221 in 1 : vector<8x8xf32>, vector<8x8xf32>, vector<8x8xf32>, vector<8x8xf32> -> vector<8x32xf32>
    %c0_72 = arith.constant 0 : index
    %c0_73 = arith.constant 0 : index
    %223 = vector.load %arg20[%c0_72, %c0_73] : memref<32x32xf32, #tpu.memory_space<vmem>>, vector<32x32xf32>
    %cst_74 = arith.constant dense<0.000000e+00> : vector<8x32xf32>
    %224 = tpu.matmul %222, %223, %cst_74 {dimension_numbers = #tpu.dot_dimension_numbers<[1], [0], [0], [1], [0, 0, 1, 1], [], []>} : vector<8x32xf32>, vector<32x32xf32>, vector<8x32xf32> -> vector<8x32xf32>
    %c0_75 = arith.constant 0 : index
    %c0_76 = arith.constant 0 : index
    %225 = vector.load %arg21[%c0_75, %c0_76] : memref<1x32xf32, #tpu.memory_space<vmem>>, vector<1x32xf32>
    %226 = vector.broadcast %225 : vector<1x32xf32> to vector<8x32xf32>
    %227 = arith.addf %224, %226 : vector<8x32xf32>
    %228 = arith.addf %140, %227 : vector<8x32xf32>
    %c0_77 = arith.constant 0 : index
    %c0_78 = arith.constant 0 : index
    %229 = vector.load %arg22[%c0_77, %c0_78] : memref<1x32xf32, #tpu.memory_space<vmem>>, vector<1x32xf32>
    %c0_79 = arith.constant 0 : index
    %c0_80 = arith.constant 0 : index
    %230 = vector.load %arg23[%c0_79, %c0_80] : memref<1x32xf32, #tpu.memory_space<vmem>>, vector<1x32xf32>
    %cst_81 = arith.constant dense<0.000000e+00> : vector<8xf32>
    %231 = vector.multi_reduction <add>, %228, %cst_81 [1] : vector<8x32xf32> to vector<8xf32>
    %232 = vector.shape_cast %231 : vector<8xf32> to vector<8x1xf32>
    %cst_82 = arith.constant 3.200000e+01 : f32
    %233 = vector.broadcast %cst_82 : f32 to vector<8x1xf32>
    %234 = arith.divf %232, %233 : vector<8x1xf32>
    %235 = vector.broadcast %234 : vector<8x1xf32> to vector<8x32xf32>
    %236 = arith.subf %228, %235 : vector<8x32xf32>
    %237 = arith.mulf %236, %236 : vector<8x32xf32>
    %cst_83 = arith.constant dense<0.000000e+00> : vector<8xf32>
    %238 = vector.multi_reduction <add>, %237, %cst_83 [1] : vector<8x32xf32> to vector<8xf32>
    %239 = vector.shape_cast %238 : vector<8xf32> to vector<8x1xf32>
    %cst_84 = arith.constant 3.200000e+01 : f32
    %240 = vector.broadcast %cst_84 : f32 to vector<8x1xf32>
    %241 = arith.divf %239, %240 : vector<8x1xf32>
    %242 = vector.broadcast %234 : vector<8x1xf32> to vector<8x32xf32>
    %243 = arith.subf %228, %242 : vector<8x32xf32>
    %cst_85 = arith.constant 9.99999974E-6 : f32
    %244 = vector.broadcast %cst_85 : f32 to vector<8x1xf32>
    %245 = arith.addf %241, %244 : vector<8x1xf32>
    %246 = math.rsqrt %245 : vector<8x1xf32>
    %247 = vector.broadcast %246 : vector<8x1xf32> to vector<8x32xf32>
    %248 = arith.mulf %243, %247 : vector<8x32xf32>
    %249 = vector.broadcast %229 : vector<1x32xf32> to vector<8x32xf32>
    %250 = arith.mulf %248, %249 : vector<8x32xf32>
    %251 = vector.broadcast %230 : vector<1x32xf32> to vector<8x32xf32>
    %252 = arith.addf %250, %251 : vector<8x32xf32>
    %c0_86 = arith.constant 0 : index
    %c0_87 = arith.constant 0 : index
    %253 = vector.load %arg24[%c0_86, %c0_87] : memref<32x128xf32, #tpu.memory_space<vmem>>, vector<32x128xf32>
    %cst_88 = arith.constant dense<0.000000e+00> : vector<8x128xf32>
    %254 = tpu.matmul %252, %253, %cst_88 {dimension_numbers = #tpu.dot_dimension_numbers<[1], [0], [0], [1], [0, 0, 1, 1], [], []>} : vector<8x32xf32>, vector<32x128xf32>, vector<8x128xf32> -> vector<8x128xf32>
    %c0_89 = arith.constant 0 : index
    %c0_90 = arith.constant 0 : index
    %255 = vector.load %arg25[%c0_89, %c0_90] : memref<1x128xf32, #tpu.memory_space<vmem>>, vector<1x128xf32>
    %256 = vector.broadcast %255 : vector<1x128xf32> to vector<8x128xf32>
    %257 = arith.addf %254, %256 : vector<8x128xf32>
    %cst_91 = arith.constant 1.702000e+00 : f32
    %258 = vector.broadcast %cst_91 : f32 to vector<8x128xf32>
    %259 = arith.mulf %258, %257 : vector<8x128xf32>
    %260 = arith.negf %259 : vector<8x128xf32>
    %261 = math.exp %260 : vector<8x128xf32>
    %cst_92 = arith.constant 1.000000e+00 : f32
    %262 = vector.broadcast %cst_92 : f32 to vector<8x128xf32>
    %263 = arith.addf %262, %261 : vector<8x128xf32>
    %264 = arith.divf %262, %263 : vector<8x128xf32>
    %265 = arith.mulf %257, %264 : vector<8x128xf32>
    %c0_93 = arith.constant 0 : index
    %c0_94 = arith.constant 0 : index
    %266 = vector.load %arg26[%c0_93, %c0_94] : memref<128x32xf32, #tpu.memory_space<vmem>>, vector<128x32xf32>
    %cst_95 = arith.constant dense<0.000000e+00> : vector<8x32xf32>
    %267 = tpu.matmul %265, %266, %cst_95 {dimension_numbers = #tpu.dot_dimension_numbers<[1], [0], [0], [1], [0, 0, 1, 1], [], []>} : vector<8x128xf32>, vector<128x32xf32>, vector<8x32xf32> -> vector<8x32xf32>
    %c0_96 = arith.constant 0 : index
    %c0_97 = arith.constant 0 : index
    %268 = vector.load %arg27[%c0_96, %c0_97] : memref<1x32xf32, #tpu.memory_space<vmem>>, vector<1x32xf32>
    %269 = vector.broadcast %268 : vector<1x32xf32> to vector<8x32xf32>
    %270 = arith.addf %267, %269 : vector<8x32xf32>
    %271 = arith.addf %228, %270 : vector<8x32xf32>
    %c0_98 = arith.constant 0 : index
    %c0_99 = arith.constant 0 : index
    %c0_100 = arith.constant 0 : index
    %272 = vector.load %arg32[%c0_98, %c0_99, %c0_100] : memref<1x8x32xf32, #tpu.memory_space<vmem>>, vector<1x8x32xf32>
    %273 = vector.shape_cast %272 : vector<1x8x32xf32> to vector<8x32xf32>
    %274 = vector.shape_cast %271 : vector<8x32xf32> to vector<1x8x32xf32>
    tpu.vector_store %arg32[%c0_98, %c0_99, %c0_100], %274 {strides = array<i32>} : memref<1x8x32xf32, #tpu.memory_space<vmem>>, vector<1x8x32xf32>,
    %275 = vector.extract_strided_slice %271 {offsets = [0, 0], sizes = [1, 32], strides = [1, 1]} : vector<8x32xf32> to vector<1x32xf32>
    %c0_101 = arith.constant 0 : index
    %c0_102 = arith.constant 0 : index
    %276 = vector.load %arg28[%c0_101, %c0_102] : memref<1x32xf32, #tpu.memory_space<vmem>>, vector<1x32xf32>
    %c0_103 = arith.constant 0 : index
    %c0_104 = arith.constant 0 : index
    %277 = vector.load %arg29[%c0_103, %c0_104] : memref<1x32xf32, #tpu.memory_space<vmem>>, vector<1x32xf32>
    %cst_105 = arith.constant dense<0.000000e+00> : vector<1xf32>
    %278 = vector.multi_reduction <add>, %275, %cst_105 [1] : vector<1x32xf32> to vector<1xf32>
    %279 = vector.shape_cast %278 : vector<1xf32> to vector<1x1xf32>
    %cst_106 = arith.constant 3.200000e+01 : f32
    %280 = vector.broadcast %cst_106 : f32 to vector<1x1xf32>
    %281 = arith.divf %279, %280 : vector<1x1xf32>
    %282 = vector.broadcast %281 : vector<1x1xf32> to vector<1x32xf32>
    %283 = arith.subf %275, %282 : vector<1x32xf32>
    %284 = arith.mulf %283, %283 : vector<1x32xf32>
    %cst_107 = arith.constant dense<0.000000e+00> : vector<1xf32>
    %285 = vector.multi_reduction <add>, %284, %cst_107 [1] : vector<1x32xf32> to vector<1xf32>
    %286 = vector.shape_cast %285 : vector<1xf32> to vector<1x1xf32>
    %cst_108 = arith.constant 3.200000e+01 : f32
    %287 = vector.broadcast %cst_108 : f32 to vector<1x1xf32>
    %288 = arith.divf %286, %287 : vector<1x1xf32>
    %289 = vector.broadcast %281 : vector<1x1xf32> to vector<1x32xf32>
    %290 = arith.subf %275, %289 : vector<1x32xf32>
    %cst_109 = arith.constant 9.99999974E-6 : f32
    %291 = vector.broadcast %cst_109 : f32 to vector<1x1xf32>
    %292 = arith.addf %288, %291 : vector<1x1xf32>
    %293 = math.rsqrt %292 : vector<1x1xf32>
    %294 = vector.broadcast %293 : vector<1x1xf32> to vector<1x32xf32>
    %295 = arith.mulf %290, %294 : vector<1x32xf32>
    %296 = arith.mulf %295, %276 : vector<1x32xf32>
    %297 = arith.addf %296, %277 : vector<1x32xf32>
    %c0_110 = arith.constant 0 : index
    %c0_111 = arith.constant 0 : index
    %298 = vector.load %arg30[%c0_110, %c0_111] : memref<32x32xf32, #tpu.memory_space<vmem>>, vector<32x32xf32>
    %cst_112 = arith.constant dense<0.000000e+00> : vector<1x32xf32>
    %299 = tpu.matmul %297, %298, %cst_112 {dimension_numbers = #tpu.dot_dimension_numbers<[1], [0], [0], [1], [0, 0, 1, 1], [], []>} : vector<1x32xf32>, vector<32x32xf32>, vector<1x32xf32> -> vector<1x32xf32>
    %c0_113 = arith.constant 0 : index
    %c0_114 = arith.constant 0 : index
    %300 = vector.load %arg31[%c0_113, %c0_114] : memref<1x32xf32, #tpu.memory_space<vmem>>, vector<1x32xf32>
    %301 = arith.addf %299, %300 : vector<1x32xf32>
    %cst_115 = arith.constant 1.702000e+00 : f32
    %302 = vector.broadcast %cst_115 : f32 to vector<1x32xf32>
    %303 = arith.mulf %302, %301 : vector<1x32xf32>
    %304 = arith.negf %303 : vector<1x32xf32>
    %305 = math.exp %304 : vector<1x32xf32>
    %cst_116 = arith.constant 1.000000e+00 : f32
    %306 = vector.broadcast %cst_116 : f32 to vector<1x32xf32>
    %307 = arith.addf %306, %305 : vector<1x32xf32>
    %308 = arith.divf %306, %307 : vector<1x32xf32>
    %309 = arith.mulf %301, %308 : vector<1x32xf32>
    %c0_117 = arith.constant 0 : index
    %c0_118 = arith.constant 0 : index
    %c0_119 = arith.constant 0 : index
    %310 = vector.load %arg33[%c0_117, %c0_118, %c0_119] : memref<1x1x32xf32, #tpu.memory_space<vmem>>, vector<1x1x32xf32>
    %311 = vector.shape_cast %310 : vector<1x1x32xf32> to vector<1x32xf32>
    %312 = vector.shape_cast %309 : vector<1x32xf32> to vector<1x1x32xf32>
    tpu.vector_store %arg33[%c0_117, %c0_118, %c0_119], %312 {strides = array<i32>} : memref<1x1x32xf32, #tpu.memory_space<vmem>>, vector<1x1x32xf32>,
    return
  }
  func.func @transform_0(%arg0: i32) -> (i32, i32, i32) {
    %c0_i32 = arith.constant 0 : i32
    %c0_i32_0 = arith.constant 0 : i32
    %c0_i32_1 = arith.constant 0 : i32
    return %arg0, %c0_i32, %c0_i32_0 : i32, i32, i32
  }
  func.func @transform_1(%arg0: i32) -> (i32, i32, i32) {
    %c0_i32 = arith.constant 0 : i32
    %c0_i32_0 = arith.constant 0 : i32
    %c0_i32_1 = arith.constant 0 : i32
    return %arg0, %c0_i32, %c0_i32_0 : i32, i32, i32
  }
  func.func @transform_2(%arg0: i32) -> (i32, i32) {
    %c0_i32 = arith.constant 0 : i32
    %c0_i32_0 = arith.constant 0 : i32
    %c0_i32_1 = arith.constant 0 : i32
    return %c0_i32, %c0_i32_0 : i32, i32
  }
  func.func @transform_3(%arg0: i32) -> (i32, i32) {
    %c0_i32 = arith.constant 0 : i32
    %c0_i32_0 = arith.constant 0 : i32
    %c0_i32_1 = arith.constant 0 : i32
    return %c0_i32, %c0_i32_0 : i32, i32
  }
  func.func @transform_4(%arg0: i32) -> (i32, i32) {
    %c0_i32 = arith.constant 0 : i32
    %c0_i32_0 = arith.constant 0 : i32
    %c0_i32_1 = arith.constant 0 : i32
    return %c0_i32, %c0_i32_0 : i32, i32
  }
  func.func @transform_5(%arg0: i32) -> (i32, i32) {
    %c0_i32 = arith.constant 0 : i32
    %c0_i32_0 = arith.constant 0 : i32
    %c0_i32_1 = arith.constant 0 : i32
    return %c0_i32, %c0_i32_0 : i32, i32
  }
  func.func @transform_6(%arg0: i32) -> (i32, i32) {
    %c0_i32 = arith.constant 0 : i32
    %c0_i32_0 = arith.constant 0 : i32
    %c0_i32_1 = arith.constant 0 : i32
    return %c0_i32, %c0_i32_0 : i32, i32
  }
  func.func @transform_7(%arg0: i32) -> (i32, i32) {
    %c0_i32 = arith.constant 0 : i32
    %c0_i32_0 = arith.constant 0 : i32
    %c0_i32_1 = arith.constant 0 : i32
    return %c0_i32, %c0_i32_0 : i32, i32
  }
  func.func @transform_8(%arg0: i32) -> (i32, i32) {
    %c0_i32 = arith.constant 0 : i32
    %c0_i32_0 = arith.constant 0 : i32
    %c0_i32_1 = arith.constant 0 : i32
    return %c0_i32, %c0_i32_0 : i32, i32
  }
  func.func @transform_9(%arg0: i32) -> (i32, i32) {
    %c0_i32 = arith.constant 0 : i32
    %c0_i32_0 = arith.constant 0 : i32
    %c0_i32_1 = arith.constant 0 : i32
    return %c0_i32, %c0_i32_0 : i32, i32
  }
  func.func @transform_10(%arg0: i32) -> (i32, i32) {
    %c0_i32 = arith.constant 0 : i32
    %c0_i32_0 = arith.constant 0 : i32
    %c0_i32_1 = arith.constant 0 : i32
    return %c0_i32, %c0_i32_0 : i32, i32
  }
  func.func @transform_11(%arg0: i32) -> (i32, i32) {
    %c0_i32 = arith.constant 0 : i32
    %c0_i32_0 = arith.constant 0 : i32
    %c0_i32_1 = arith.constant 0 : i32
    return %c0_i32, %c0_i32_0 : i32, i32
  }
  func.func @transform_12(%arg0: i32) -> (i32, i32) {
    %c0_i32 = arith.constant 0 : i32
    %c0_i32_0 = arith.constant 0 : i32
    %c0_i32_1 = arith.constant 0 : i32
    return %c0_i32, %c0_i32_0 : i32, i32
  }
  func.func @transform_13(%arg0: i32) -> (i32, i32) {
    %c0_i32 = arith.constant 0 : i32
    %c0_i32_0 = arith.constant 0 : i32
    %c0_i32_1 = arith.constant 0 : i32
    return %c0_i32, %c0_i32_0 : i32, i32
  }
  func.func @transform_14(%arg0: i32) -> (i32, i32) {
    %c0_i32 = arith.constant 0 : i32
    %c0_i32_0 = arith.constant 0 : i32
    %c0_i32_1 = arith.constant 0 : i32
    return %c0_i32, %c0_i32_0 : i32, i32
  }
  func.func @transform_15(%arg0: i32) -> (i32, i32) {
    %c0_i32 = arith.constant 0 : i32
    %c0_i32_0 = arith.constant 0 : i32
    %c0_i32_1 = arith.constant 0 : i32
    return %c0_i32, %c0_i32_0 : i32, i32
  }
  func.func @transform_16(%arg0: i32) -> (i32, i32) {
    %c0_i32 = arith.constant 0 : i32
    %c0_i32_0 = arith.constant 0 : i32
    %c0_i32_1 = arith.constant 0 : i32
    return %c0_i32, %c0_i32_0 : i32, i32
  }
  func.func @transform_17(%arg0: i32) -> (i32, i32) {
    %c0_i32 = arith.constant 0 : i32
    %c0_i32_0 = arith.constant 0 : i32
    %c0_i32_1 = arith.constant 0 : i32
    return %c0_i32, %c0_i32_0 : i32, i32
  }
  func.func @transform_18(%arg0: i32) -> (i32, i32) {
    %c0_i32 = arith.constant 0 : i32
    %c0_i32_0 = arith.constant 0 : i32
    %c0_i32_1 = arith.constant 0 : i32
    return %c0_i32, %c0_i32_0 : i32, i32
  }
  func.func @transform_19(%arg0: i32) -> (i32, i32) {
    %c0_i32 = arith.constant 0 : i32
    %c0_i32_0 = arith.constant 0 : i32
    %c0_i32_1 = arith.constant 0 : i32
    return %c0_i32, %c0_i32_0 : i32, i32
  }
  func.func @transform_20(%arg0: i32) -> (i32, i32) {
    %c0_i32 = arith.constant 0 : i32
    %c0_i32_0 = arith.constant 0 : i32
    %c0_i32_1 = arith.constant 0 : i32
    return %c0_i32, %c0_i32_0 : i32, i32
  }
  func.func @transform_21(%arg0: i32) -> (i32, i32) {
    %c0_i32 = arith.constant 0 : i32
    %c0_i32_0 = arith.constant 0 : i32
    %c0_i32_1 = arith.constant 0 : i32
    return %c0_i32, %c0_i32_0 : i32, i32
  }
  func.func @transform_22(%arg0: i32) -> (i32, i32) {
    %c0_i32 = arith.constant 0 : i32
    %c0_i32_0 = arith.constant 0 : i32
    %c0_i32_1 = arith.constant 0 : i32
    return %c0_i32, %c0_i32_0 : i32, i32
  }
  func.func @transform_23(%arg0: i32) -> (i32, i32) {
    %c0_i32 = arith.constant 0 : i32
    %c0_i32_0 = arith.constant 0 : i32
    %c0_i32_1 = arith.constant 0 : i32
    return %c0_i32, %c0_i32_0 : i32, i32
  }
  func.func @transform_24(%arg0: i32) -> (i32, i32) {
    %c0_i32 = arith.constant 0 : i32
    %c0_i32_0 = arith.constant 0 : i32
    %c0_i32_1 = arith.constant 0 : i32
    return %c0_i32, %c0_i32_0 : i32, i32
  }
  func.func @transform_25(%arg0: i32) -> (i32, i32) {
    %c0_i32 = arith.constant 0 : i32
    %c0_i32_0 = arith.constant 0 : i32
    %c0_i32_1 = arith.constant 0 : i32
    return %c0_i32, %c0_i32_0 : i32, i32
  }
  func.func @transform_26(%arg0: i32) -> (i32, i32) {
    %c0_i32 = arith.constant 0 : i32
    %c0_i32_0 = arith.constant 0 : i32
    %c0_i32_1 = arith.constant 0 : i32
    return %c0_i32, %c0_i32_0 : i32, i32
  }
  func.func @transform_27(%arg0: i32) -> (i32, i32) {
    %c0_i32 = arith.constant 0 : i32
    %c0_i32_0 = arith.constant 0 : i32
    %c0_i32_1 = arith.constant 0 : i32
    return %c0_i32, %c0_i32_0 : i32, i32
  }
  func.func @transform_28(%arg0: i32) -> (i32, i32) {
    %c0_i32 = arith.constant 0 : i32
    %c0_i32_0 = arith.constant 0 : i32
    %c0_i32_1 = arith.constant 0 : i32
    return %c0_i32, %c0_i32_0 : i32, i32
  }
  func.func @transform_29(%arg0: i32) -> (i32, i32) {
    %c0_i32 = arith.constant 0 : i32
    %c0_i32_0 = arith.constant 0 : i32
    %c0_i32_1 = arith.constant 0 : i32
    return %c0_i32, %c0_i32_0 : i32, i32
  }
  func.func @transform_30(%arg0: i32) -> (i32, i32) {
    %c0_i32 = arith.constant 0 : i32
    %c0_i32_0 = arith.constant 0 : i32
    %c0_i32_1 = arith.constant 0 : i32
    return %c0_i32, %c0_i32_0 : i32, i32
  }
  func.func @transform_31(%arg0: i32) -> (i32, i32, i32) {
    %c0_i32 = arith.constant 0 : i32
    %c0_i32_0 = arith.constant 0 : i32
    %c0_i32_1 = arith.constant 0 : i32
    return %arg0, %c0_i32, %c0_i32_0 : i32, i32, i32
  }
  func.func @transform_32(%arg0: i32) -> (i32, i32, i32) {
    %c0_i32 = arith.constant 0 : i32
    %c0_i32_0 = arith.constant 0 : i32
    %c0_i32_1 = arith.constant 0 : i32
    return %arg0, %c0_i32, %c0_i32_0 : i32, i32, i32
  }
}

</mosaic_0001>

<bundles_post_ra>
// kernel: tpu_custom_call.1
= control target key start
LH: loop header
LB: loop body
LE: loop exit
PB: predicated region body
PF: predicated region fallthrough
CT: control target
= control target key end

     0   :  { %s4194_s6 = smov 1   ;;  %s4195_s10 = smov 2   ;;  %s4870_s0 = inlined_call_operand.smem [shape: u32[33], index: -1, kind: input, shape index: {}] }
   0x1   :  { %s4247_s5 = sld [smem:[%s4870_s0]]   ;;  %s4196_s14 = smov 3  }
   0x2   :  { %s4252_s9 = sld [smem:[%s4870_s0 + %s4194_s6]]   ;;  %s4197_s18 = smov 4  }
   0x3   :  { %s4257_s13 = sld [smem:[%s4870_s0 + %s4195_s10]]   ;;  %s4198_s22 = smov 5  }
   0x4   :  { %s4262_s17 = sld [smem:[%s4870_s0 + %s4196_s14]]   ;;  %s4199_s26 = smov 6  }
   0x5   :  { %s4267_s21 = sld [smem:[%s4870_s0 + %s4197_s18]]   ;;  %s4200_s30 = smov 7  }
   0x6   :  { %s4272_s25 = sld [smem:[%s4870_s0 + %s4198_s22]]   ;;  %s4201_s4 = smov 8  }
   0x7   :  { %4890 = sst [smem:[#allocation8_spill]] %s4247_s5  ;;  %s4202_s10 = smov 9  }
   0x8   :  { %4891 = sst [smem:[#allocation9_spill]] %s4252_s9  ;;  %s4203_s15 = smov 10  }
   0x9   :  { %4892 = sst [smem:[#allocation10_spill]] %s4257_s13  ;;  %s4204_s20 = smov 11  }
   0xa   :  { %s4277_s29 = sld [smem:[%s4870_s0 + %s4199_s26]]   ;;  %s4205_s26 = smov 12  }
   0xb   :  { %s4282_s3 = sld [smem:[%s4870_s0 + %s4200_s30]]   ;;  %s4206_s1 = smov 13  }
   0xc   :  { %s4287_s8 = sld [smem:[%s4870_s0 + %s4201_s4]]   ;;  %s4207_s7 = smov 14  }
   0xd   :  { %s4292_s14 = sld [smem:[%s4870_s0 + %s4202_s10]]   ;;  %s4209_s22 = smov 16  }
   0xe   :  { %s4297_s19 = sld [smem:[%s4870_s0 + %s4203_s15]]   ;;  %s4208_s15 = smov 15  }
   0xf   :  { %s4302_s24 = sld [smem:[%s4870_s0 + %s4204_s20]]   ;;  %s4210_s28 = smov 17  }
  0x10   :  { %s4307_s30 = sld [smem:[%s4870_s0 + %s4205_s26]]  }
  0x11   :  { %4893 = sst [smem:[#allocation11_spill]] %s4282_s3 }
  0x12   :  { %4894 = sst [smem:[#allocation12_spill]] %s4287_s8 }
  0x13   :  { %4895 = sst [smem:[#allocation13_spill]] %s4292_s14 }
  0x14   :  { %s4312_s6 = sld [smem:[%s4870_s0 + %s4206_s1]]  }
  0x15   :  { %s4317_s12 = sld [smem:[%s4870_s0 + %s4207_s7]]   ;;  %s4211_s7 = smov 18  }
  0x16   :  { %s4322_s20 = sld [smem:[%s4870_s0 + %s4208_s15]]   ;;  %s4212_s15 = smov 19  }
  0x17   :  { %s4327_s27 = sld [smem:[%s4870_s0 + %s4209_s22]]   ;;  %s4213_s22 = smov 20  }
  0x18   :  { %s4332_s4 = sld [smem:[%s4870_s0 + %s4210_s28]]   ;;  %s4214_s28 = smov 21  }
  0x1a   :  { %4896 = sst [smem:[#allocation14_spill]] %s4312_s6 }
  0x1b   :  { %4897 = sst [smem:[#allocation15_spill]] %s4317_s12 }
  0x1c   :  { %4898 = sst [smem:[#allocation16_spill]] %s4322_s20 }
  0x1d   :  { %4899 = sst [smem:[#allocation17_spill]] %s4327_s27 }
  0x1e   :  { %4900 = sst [smem:[#allocation18_spill]] %s4332_s4 }
  0x1f   :  { %s4337_s12 = sld [smem:[%s4870_s0 + %s4211_s7]]   ;;  %s4215_s7 = smov 22  }
  0x20   :  { %s4342_s20 = sld [smem:[%s4870_s0 + %s4212_s15]]   ;;  %s4216_s15 = smov 23  }
  0x21   :  { %s4347_s27 = sld [smem:[%s4870_s0 + %s4213_s22]]   ;;  %s4217_s22 = smov 24  }
  0x22   :  { %s4352_s4 = sld [smem:[%s4870_s0 + %s4214_s28]]   ;;  %s4218_s28 = smov 25  }
  0x25   :  { %4901 = sst [smem:[#allocation19_spill]] %s4337_s12 }
  0x26   :  { %4902 = sst [smem:[#allocation20_spill]] %s4342_s20 }
  0x27   :  { %4903 = sst [smem:[#allocation21_spill]] %s4347_s27 }
  0x28   :  { %4904 = sst [smem:[#allocation22_spill]] %s4352_s4 }
  0x29   :  { %s4357_s12 = sld [smem:[%s4870_s0 + %s4215_s7]]   ;;  %s4219_s7 = smov 26  }
  0x2a   :  { %s4362_s20 = sld [smem:[%s4870_s0 + %s4216_s15]]   ;;  %s4220_s15 = smov 27  }
  0x2b   :  { %s4367_s27 = sld [smem:[%s4870_s0 + %s4217_s22]]   ;;  %s4221_s22 = smov 28  }
  0x2c   :  { %s4372_s4 = sld [smem:[%s4870_s0 + %s4218_s28]]   ;;  %s4222_s28 = smov 29  }
  0x2f   :  { %4905 = sst [smem:[#allocation23_spill]] %s4357_s12 }
  0x30   :  { %4906 = sst [smem:[#allocation24_spill]] %s4362_s20 }
  0x31   :  { %4907 = sst [smem:[#allocation25_spill]] %s4367_s27 }
  0x32   :  { %4908 = sst [smem:[#allocation26_spill]] %s4372_s4 }
  0x33   :  { %s4377_s12 = sld [smem:[%s4870_s0 + %s4219_s7]]   ;;  %s4223_s7 = smov 30  }
  0x34   :  { %s4382_s20 = sld [smem:[%s4870_s0 + %s4220_s15]]   ;;  %s4224_s15 = smov 31  }
  0x35   :  { %s4387_s27 = sld [smem:[%s4870_s0 + %s4221_s22]]   ;;  %s4225_s22 = smov 32  }
  0x36   :  { %s4392_s4 = sld [smem:[%s4870_s0 + %s4222_s28]]  }
  0x39   :  { %4909 = sst [smem:[#allocation27_spill]] %s4377_s12 }
  0x3a   :  { %4910 = sst [smem:[#allocation28_spill]] %s4382_s20 }
  0x3b   :  { %4911 = sst [smem:[#allocation29_spill]] %s4387_s27 }
  0x3c   :  { %4912 = sst [smem:[#allocation30_spill]] %s4392_s4 }
  0x3d   :  { %s4397_s12 = sld [smem:[%s4870_s0 + %s4223_s7]]  }
  0x3e   :  { %s4402_s20 = sld [smem:[%s4870_s0 + %s4224_s15]]  }
  0x3f   :  { %s4407_s27 = sld [smem:[%s4870_s0 + %s4225_s22]]  }
  0x40   :  { %71 = vsyncpa [#allocation3], 0 }
  0x41   :  { %73 = vsyncpa [#allocation3 + $0x1], 0 }
  0x42   :  { %74 = vsyncpa [#allocation5], 0 }
  0x43   :  { %76 = vsyncpa [#allocation5 + $0x1], 0  ;;  %s4409_s28 = smov 0   ;;  %s4411_s1 = smov 0  }
  0x44   :  { %s4413_s2 = smov 0   ;;  %s4415_s7 = smov 0  }
  0x45 LB: > { %s4913_s4 = sld [smem:[#allocation30_spill]]  ;;  %s4915_s3 = sld [smem:[#allocation11_spill]]  ;;  %s4188_s2 = sphi %s4413_s2, %s4947_s2   ;;  %s4184_s1 = sphi %s4411_s1, %s4946_s1   ;;  %s4180_s28 = sphi %s4409_s28, %s4945_s28   ;;  %s4192_s7 = sphi %s4415_s7, %s4948_s7  }
  0x46   : > { %s4914_s6 = sld [smem:[#allocation14_spill]]  ;;  %s4430_s0 = sadd.s32 4294967295, %s4192_s7  }
  0x47   : > { %s3478_s10 = sadd.s32 4294967294, %s4192_s7   ;;  %s4434_s11 = sadd.s32 1, %s4192_s7  }
  0x48   : > { %s750_s15 = sadd.s32 1, %s4188_s2  ;;  %s747_s16 = ssub.s32 %s4192_s7, %s4434_s11 }
  0x49   : > { %p760_p0 = scmp.ne.s32.totalorder %s4188_s2, %s4184_s1  ;;  %p748_p1 = scmp.eq.s32.totalorder %s747_s16, 0 }
  0x4a   : > { %p761_p2 = scmp.eq.s32.totalorder %s4430_s0, 1  ;;  %p766_p3 = scmp.ne.s32.totalorder %s4184_s1, %s4180_s28 }
  0x4b   : > { %p767_p4 = scmp.eq.s32.totalorder %s3478_s10, 1  ;;  %p3481_p7 = scmp.ge.s32.totalorder %s4192_s7, 1 }
  0x4c   : > { %s4445_s18 = scalar_select %p748_p1, %s4188_s2, %s750_s15  }
  0x4d   : > { %p4447_p5 = por %p761_p2, %p760_p0  ;;  %p4451_p6 = por %p767_p4, %p766_p3 }
  0x4e   : > { %p911_p8 = scmp.lt.s32.totalorder %s4192_s7, 3 }
  0x50   : > { %p912_p9 = pnand %p3481_p7, %p911_p8 }
  0x51   : > { %s4918_s13 = sld [smem:[#allocation10_spill]] (!%p912_p9)  ;;  %s4919_s5 = sld [smem:[#allocation8_spill]] (!%p912_p9)  ;;  %vm1014_vm0 = vcmask (!%p912_p9), 261120   ;;  %v1043_v9 = vld [vmem:[%s4272_s25] sm:$0xff] (!%p912_p9)  ;;  %v1044_v10 = vld [vmem:[%s4272_s25 + $0x8] sm:$0xff] (!%p912_p9)  ;;  %v1045_v11 = vld [vmem:[%s4272_s25 + $0x10] sm:$0xff] (!%p912_p9)  ;;  %v1444_v37 = vlaneseq (!%p912_p9) }
  0x52   : > { %915 = sbr.rel (%p912_p9) target bundleno = 5897 (0x1709), region = 144  ;;  %p999_p10 = scmp.lt.s32.totalorder (!%p912_p9), %s4430_s0, 1  ;;  %v4226_v12 = vmov (!%p912_p9), 0.0|0.0   ;;  %v3868_v13 = vpack.c.bf16 (!%p912_p9), %v1044_v10, %v1043_v9  ;;  %v1046_v14 = vld [vmem:[%s4272_s25 + $0x18] sm:$0xff] (!%p912_p9)  ;;  %vm4227_vm1 = vmmov (!%p912_p9), 0   ;;  %v4228_v15 = vmov (!%p912_p9), 0.0  }
  0x53   : > { %3867 = vmatprep.subr.bf16.mxu1 (!%p912_p9), %v4226_v12  ;;  %3648 = vmatprep.mubr.msk.f32.mxu1 (!%p912_p9), %vm4227_vm1, %v4228_v15  ;;  %v3871_v16 = vpack.c.bf16 (!%p912_p9), %v1046_v14, %v1045_v11  ;;  %v3484_v21 = vld [vmem:[%s4262_s17] ss:$0 sm:$0xff] (!%p912_p9)  ;;  %s4879_s16 = smov (!%p912_p9), 104   ;;  %vm1136_vm2 = vcmask (!%p912_p9), 64512   ;;  %s4920_s9 = sld [smem:[#allocation9_spill]] (!%p912_p9)  ;;  %v1445_v40 = vshrl.u32 (!%p912_p9), %v1444_v37, 7 }
  0x54   : > { %3671 = vmatprep.subr.mxu0 (!%p912_p9), %v4228_v15  ;;  %3673 = vmatprep.mubr.msk.f32.mxu0 (!%p912_p9), %vm4227_vm1, %v4228_v15  ;;  %v3485_v23 = vld [vmem:[%s4267_s21] ss:$0 sm:$0xff] (!%p912_p9)  ;;  %s4921_s8 = sld [smem:[#allocation12_spill]] (!%p912_p9)  ;;  %vm1814_vm3 = vcmask (!%p912_p9), 130048   ;;  %vm1816_vm4 = vcmask (!%p912_p9), 195584   ;;  %s4922_s14 = sld [smem:[#allocation13_spill]] (!%p912_p9) }
  0x55   : > { %3869 = vmatpush3.bf16.msra.mxu1 (!%p912_p9), %v3868_v13  ;;  %v3486_v26 = vld [vmem:[%s4277_s29] ss:$0 sm:$0xff] (!%p912_p9)  ;;  %v1446_v42 = vsub.s32 (!%p912_p9), 0, %v1445_v40  ;;  %vm3216_vm5 = vcmask (!%p912_p9), 253952  }
  0x56   : > { %3870 = vmatprep.subr.bf16.mxu1 (!%p912_p9), %v4226_v12 }
  0x57   : > { %v1007_v0 = vld [vmem:[%s4918_s13] sm:$0xff] (!%p912_p9)  ;;  %s4237_s13 = smov (!%p912_p9), [#allocation2]  }
  0x59   : > { %s4459_s26 = scalar_select %p999_p10, %s4430_s0, 1  ;;  %3872 = vmatpush3.bf16.msra.mxu1 %v3871_v16 }
  0x5a   : > { %3651 = vmatprep.subr.mxu1 %v4228_v15 }
  0x5b   : > { %s3483_s10 = sshll.u32 %s4459_s26, 3 }
  0x5c   : > { %s1002_s15 = scalar_lea.vmem %s4919_s5, %s3483_s10  ;;  %s4883_s10 = smov 120  }
  0x5d   : > { %v1006_v1 = vld [vmem:[%s1002_s15] sm:$0xff]  ;;  %s4231_s15 = smov 112   ;;  %s4875_s5 = smov 96  }
  0x5e   : > { %v4464_v2 = vadd.f32 %v1007_v0, %v1006_v1 }
  0x60   : > { %v1015_v3 = vsel %vm1014_vm0, %v4464_v2, 0.0 }
  0x61   : > { %1016 = vadd.xlane.f32.xlu0 %v1015_v3 }
  0xee   : > { %v1017_v4 = vpop.xlane.xlu0 %1016 }
  0xef   : > { %v1019_v5 = vmul.f32 0.03125, %v1017_v4 }
  0xf1   : > { %v1020_v6 = vsub.f32 %v4464_v2, %v1019_v5 }
  0xf3   : > { %v1021_v7 = vmul.f32 %v1020_v6, %v1020_v6 }
  0xf5   : > { %v1022_v8 = vsel %vm1014_vm0, %v1021_v7, 0.0 }
  0xf6   : > { %1023 = vadd.xlane.f32.xlu0 %v1022_v8 }
 0x183   : > { %v1024_v17 = vpop.xlane.xlu0 %1023 }
 0x184   : > { %v1025_v18 = vmul.f32 0.03125, %v1024_v17 }
 0x186   : > { %v1026_v19 = vadd.f32 1e-05, %v1025_v18 }
 0x188   : > { %4044 = vrsqrt.f32 %v1026_v19 }
 0x192   : > { %v4045_v20 = vpop.eup %4044 }
 0x193   : > { %v1028_v22 = vmul.f32 %v4045_v20, %v1020_v6 }
 0x195   : > { %v1035_v24 = vmul.f32 %v3484_v21, %v1028_v22 }
 0x197   : > { %v1042_v25 = vadd.f32 %v3485_v23, %v1035_v24 }
 0x199   : > { %3649 = vmatmul.mubr.msk.f32.vlgmr.msra.gmra.mrb[0].mxu1 %vm1014_vm0, %v1042_v25 }
 0x19a   : > { %3653 = vmatprep.mubr.msk.f32.mxu1 %vm4227_vm1, %v4228_v15 }
 0x26c   : > { %v1123_v27 = vpop.f32.mrb[0].mxu1 }
 0x26d   : > { %v4488_v28 = vadd.f32 %v3486_v26, %v1123_v27  ;;  %v3650_v29 = vpop.f32.mrb[1].mxu1 }
 0x26f   : > { %1132 = vrot.lane.b32.xlu0 %v4488_v28, %s4879_s16  ;;  %1128 = vrot.lane.b32.xlu1 %v4488_v28, %s4883_s10  ;;  %s4880_s16 = smov 24   ;;  %s4927_s10 = sld [smem:[#allocation19_spill]] }
 0x273   : > { %1130 = vrot.lane.b32.xlu1 %v4488_v28, %s4231_s15 }
 0x277   : > { %1134 = vrot.lane.b32.xlu1 %v4488_v28, %s4875_s5 }
 0x2e1   : > { %v4498_v30 = vpop.permute.xlu1 %1128  ;;  %v4506_v32 = vpop.permute.xlu0 %1132 }
 0x2e2   : > { %1211 = vrot.lane.b32.xlu1 %v4498_v30, %s4875_s5 }
 0x2e5   : > { %v4502_v31 = vpop.permute.xlu1 %1130 }
 0x2e6   : > { %1287 = vrot.lane.b32.xlu1 %v4502_v31, %s4875_s5 }
 0x2e9   : > { %v1135_v33 = vpop.permute.xlu1 %1134 }
 0x2ea   : > { %1363 = vrot.lane.b32.xlu1 %v4506_v32, %s4875_s5  ;;  %3652 = vmatpush3.xpose.msk.msra.mxu1 %vm1136_vm2, %v1135_v33  ;;  %s1005_s5 = scalar_lea.vmem %s4920_s9, %s4459_s26  ;;  %s4882_s26 = smov 8  }
 0x2eb   : > { %3656 = vmatprep.subr.mxu1 %v4228_v15  ;;  %v1009_v38 = vld [vmem:[%s1005_s5] sm:$0x1]  ;;  %s4877_s5 = smov 64  }
 0x2ec   : > { %v1010_v39 = vsub.f32 1.0, %v1009_v38 }
 0x2ed   : > { %3654 = vmatmul.mubr.msk.f32.vlgmr.msra.gmra.mrb[2].mxu1 %vm1136_vm2, %v4488_v28 }
 0x2ee   : > { %3658 = vmatprep.mubr.msk.f32.mxu1 %vm4227_vm1, %v4228_v15  ;;  %v1011_v41 = vmul.f32 -1000000.0, %v1010_v39 }
 0x2f0   : > { %v4536_v43 = vrot.slane %v1011_v41, %v1446_v42  ;;  %v1818_v41 = vld [vmem:[%s4915_s3] sm:$0xff]  ;;  %v1819_v42 = vld [vmem:[%s4915_s3 + $0x8] sm:$0xff] }
 0x354   : > { %v1212_v34 = vpop.permute.xlu1 %1211 }
 0x355   : > { %3657 = vmatpush3.xpose.msk.msra.mxu1 %vm1136_vm2, %v1212_v34 }
 0x356   : > { %3661 = vmatprep.subr.mxu1 %v4228_v15 }
 0x358   : > { %3659 = vmatmul.mubr.msk.f32.vlgmr.msra.gmra.mrb[4].mxu1 %vm1136_vm2, %v4498_v30  ;;  %v1288_v35 = vpop.permute.xlu1 %1287 }
 0x359   : > { %3662 = vmatpush3.xpose.msk.msra.mxu1 %vm1136_vm2, %v1288_v35  ;;  %3663 = vmatprep.mubr.msk.f32.mxu1 %vm4227_vm1, %v4228_v15 }
 0x35a   : > { %3666 = vmatprep.subr.mxu1 %v4228_v15 }
 0x35c   : > { %3664 = vmatmul.mubr.msk.f32.vlgmr.msra.gmra.mrb[6].mxu1 %vm1136_vm2, %v4502_v31  ;;  %v1364_v36 = vpop.permute.xlu1 %1363 }
 0x35d   : > { %3667 = vmatpush3.xpose.msk.msra.mxu1 %vm1136_vm2, %v1364_v36  ;;  %3668 = vmatprep.mubr.msk.f32.mxu1 %vm4227_vm1, %v4228_v15 }
 0x35e   : > { %3676 = vmatprep.subr.mxu1 %v4228_v15 }
 0x360   : > { %3669 = vmatmul.mubr.msk.f32.vlgmr.msra.gmra.mrb[8].mxu1 %vm1136_vm2, %v4506_v32 }
 0x361   : > { %3678 = vmatprep.mubr.msk.f32.mxu1 %vm4227_vm1, %v4228_v15 }
 0x3c0   : > { %v1207_v44 = vpop.f32.mrb[2].mxu1 }
 0x3c1   : > { %v1439_v45 = vmul.f32 0.35355338, %v1207_v44  ;;  %v3655_v46 = vpop.f32.mrb[3].mxu1  ;;  %v3874_v44 = vpack.c.bf16 %v1819_v42, %v1818_v41  ;;  %v2036_v42 = vld [vmem:[%s4914_s6 + $0x60] sm:$0xff] }
 0x3c2   : > { %v1821_v46 = vld [vmem:[%s4915_s3 + $0x18] sm:$0xff] }
 0x3c3   : > { %v1449_v47 = vadd.f32 %v4536_v43, %v1439_v45  ;;  %v1820_v45 = vld [vmem:[%s4915_s3 + $0x10] sm:$0xff]  ;;  %s4928_s3 = smov 120  }
 0x3c5   : > { %v1453_v48 = vsel %vm1136_vm2, %v1449_v47, -inf }
 0x3c6   : > { %1454 = vmax.xlane.f32.xlu1 %v1453_v48 }
 0x42b   : > { %v1283_v49 = vpop.f32.mrb[4].mxu1 }
 0x42c   : > { %v1440_v50 = vmul.f32 0.35355338, %v1283_v49  ;;  %v3660_v51 = vpop.f32.mrb[5].mxu1 }
 0x42e   : > { %v1450_v52 = vadd.f32 %v4536_v43, %v1440_v50 }
 0x42f   : > { %v1359_v53 = vpop.f32.mrb[6].mxu1 }
 0x430   : > { %v1441_v54 = vmul.f32 0.35355338, %v1359_v53  ;;  %v3665_v55 = vpop.f32.mrb[7].mxu1  ;;  %v1456_v56 = vsel %vm1136_vm2, %v1450_v52, -inf }
 0x431   : > { %1457 = vmax.xlane.f32.xlu0 %v1456_v56 }
 0x432   : > { %v1451_v57 = vadd.f32 %v4536_v43, %v1441_v54 }
 0x433   : > { %v1435_v58 = vpop.f32.mrb[8].mxu1 }
 0x434   : > { %v1442_v59 = vmul.f32 0.35355338, %v1435_v58  ;;  %v3670_v60 = vpop.f32.mrb[9].mxu1  ;;  %v1459_v61 = vsel %vm1136_vm2, %v1451_v57, -inf }
 0x435   : > { %1460 = vmax.xlane.f32.xlu1 %v1459_v61  ;;  %v3500_v60 = vld [vmem:[%s4921_s8] ss:$0 sm:$0xff] }
 0x436   : > { %v1452_v62 = vadd.f32 %v4536_v43, %v1442_v59 }
 0x438   : > { %v1462_v63 = vsel %vm1136_vm2, %v1452_v62, -inf }
 0x439   : > { %1463 = vmax.xlane.f32.xlu0 %v1462_v63 }
 0x446   : > { %1497 = vrot.lane.b32.xlu1 %v4488_v28, %s4877_s5 }
 0x453   : > { %v1455_v0 = vpop.xlane.xlu1 %1454 }
 0x454   : > { %v1465_v1 = vsub.f32 %v1449_v47, %v1455_v0  ;;  %v3877_v47 = vpack.c.bf16 %v1821_v46, %v1820_v45  ;;  %v2038_v46 = vld [vmem:[%s4914_s6 + $0x70] sm:$0xff] }
 0x456   : > { %v1469_v3 = vmul.f32 1.442695, %v1465_v1 }
 0x458   : > { %4046 = vpow2.f32 %v1469_v3 }
 0x462   : > { %v4047_v4 = vpop.eup %4046 }
 0x463   : > { %v1477_v5 = vsel %vm1136_vm2, %v4047_v4, 0.0 }
 0x46a   : > { %1478 = vadd.xlane.f32.xlu1 %v1477_v5 }
 0x4be   : > { %v1458_v6 = vpop.xlane.xlu0 %1457 }
 0x4bf   : > { %v1466_v7 = vsub.f32 %v1450_v52, %v1458_v6 }
 0x4c1   : > { %v1471_v8 = vmul.f32 1.442695, %v1466_v7 }
 0x4c2   : > { %v1461_v9 = vpop.xlane.xlu1 %1460 }
 0x4c3   : > { %4048 = vpow2.f32 %v1471_v8  ;;  %v1467_v10 = vsub.f32 %v1451_v57, %v1461_v9  ;;  %v1932_v8 = vld [vmem:[%s4302_s24] sm:$0xff]  ;;  %v1933_v9 = vld [vmem:[%s4302_s24 + $0x8] sm:$0xff] }
 0x4c5   : > { %v1473_v11 = vmul.f32 1.442695, %v1467_v10  ;;  %v3880_v10 = vpack.c.bf16 %v1933_v9, %v1932_v8 }
 0x4c6   : > { %v1498_v13 = vpop.permute.xlu1 %1497  ;;  %v1464_v14 = vpop.xlane.xlu0 %1463 }
 0x4c7   : > { %4050 = vpow2.f32 %v1473_v11  ;;  %v1468_v16 = vsub.f32 %v1452_v62, %v1464_v14  ;;  %3672 = vmatpush3.msra.mxu0 %v1498_v13  ;;  %v1935_v11 = vld [vmem:[%s4302_s24 + $0x18] sm:$0xff] }
 0x4c8   : > { %3681 = vmatprep.subr.mxu0 %v4228_v15 }
 0x4c9   : > { %v1475_v17 = vmul.f32 1.442695, %v1468_v16 }
 0x4cb   : > { %4052 = vpow2.f32 %v1475_v17 }
 0x4cd   : > { %v4049_v18 = vpop.eup %4048 }
 0x4ce   : > { %v1480_v19 = vsel %vm1136_vm2, %v4049_v18, 0.0 }
 0x4cf   : > { %1481 = vadd.xlane.f32.xlu0 %v1480_v19  ;;  %v3502_v19 = vld [vmem:[%s4922_s14] ss:$0 sm:$0xff]  ;;  %s4102_s14 = sshll.u32 %s4237_s13, 4  ;;  %s4103_s14 = int_to_ptr.vmem [resolvable:$false] %s4102_s14 }
 0x4d1   : > { %v4051_v20 = vpop.eup %4050 }
 0x4d2   : > { %v1483_v21 = vsel %vm1136_vm2, %v4051_v20, 0.0 }
 0x4d3   : > { %1484 = vadd.xlane.f32.xlu1 %v1483_v21  ;;  %v3503_v21 = vld [vmem:[%s4297_s19] ss:$0 sm:$0xff] }
 0x4d5   : > { %v4053_v22 = vpop.eup %4052 }
 0x4d6   : > { %v1486_v23 = vsel %vm1136_vm2, %v4053_v22, 0.0 }
 0x4d7   : > { %1487 = vadd.xlane.f32.xlu0 %v1486_v23 }
 0x4e4   : > { %1649 = vrot.lane.b32.xlu1 %v4502_v31, %s4877_s5 }
 0x4e8   : > { %1725 = vrot.lane.b32.xlu1 %v4506_v32, %s4877_s5 }
 0x4ed   : > { %1573 = vrot.lane.b32.xlu0 %v4498_v30, %s4877_s5  ;;  %s4881_s5 = smov 16  }
 0x4f7   : > { %v1479_v24 = vpop.xlane.xlu1 %1478 }
 0x4f8   : > { %4054 = vrcp.f32 %v1479_v24  ;;  %v2024_v24 = vld [vmem:[%s4914_s6] sm:$0xff] }
 0x502   : > { %v4055_v25 = vpop.eup %4054 }
 0x503   : > { %v1493_v26 = vmul.f32 %v4055_v25, %v4047_v4  ;;  %v2025_v25 = vld [vmem:[%s4914_s6 + $0x8] sm:$0xff] }
 0x505   : > { %3674 = vmatmul.mubr.msk.f32.vlgmr.msra.gmra.mrb[0].mxu0 %vm1136_vm2, %v1493_v26  ;;  %v3886_v26 = vpack.c.bf16 %v2025_v25, %v2024_v24 }
 0x506   : > { %3683 = vmatprep.mubr.msk.f32.mxu0 %vm4227_vm1, %v4228_v15 }
 0x55c   : > { %v1482_v27 = vpop.xlane.xlu0 %1481 }
 0x55d   : > { %4056 = vrcp.f32 %v1482_v27  ;;  %v2026_v27 = vld [vmem:[%s4914_s6 + $0x10] sm:$0xff] }
 0x560   : > { %v1485_v28 = vpop.xlane.xlu1 %1484 }
 0x561   : > { %4058 = vrcp.f32 %v1485_v28  ;;  %v2027_v28 = vld [vmem:[%s4914_s6 + $0x18] sm:$0xff] }
 0x564   : > { %v1650_v29 = vpop.permute.xlu1 %1649  ;;  %v1488_v31 = vpop.xlane.xlu0 %1487 }
 0x565   : > { %4060 = vrcp.f32 %v1488_v31  ;;  %3682 = vmatpush3.msra.mxu0 %v1650_v29  ;;  %v3889_v29 = vpack.c.bf16 %v2027_v28, %v2026_v27  ;;  %v2028_v31 = vld [vmem:[%s4914_s6 + $0x20] sm:$0xff] }
 0x566   : > { %3873 = vmatprep.subr.bf16.mxu0 %v4226_v12 }
 0x567   : > { %v4057_v30 = vpop.eup %4056 }
 0x568   : > { %v1494_v32 = vmul.f32 %v4057_v30, %v4049_v18  ;;  %v1574_v33 = vpop.permute.xlu0 %1573  ;;  %v1726_v34 = vpop.permute.xlu1 %1725  ;;  %v2029_v30 = vld [vmem:[%s4914_s6 + $0x28] sm:$0xff] }
 0x569   : > { %3677 = vmatpush3.msra.mxu1 %v1574_v33  ;;  %v2030_v33 = vld [vmem:[%s4914_s6 + $0x30] sm:$0xff] }
 0x56a   : > { %3679 = vmatmul.mubr.msk.f32.vlgmr.msra.gmra.mrb[10].mxu1 %vm1136_vm2, %v1494_v32  ;;  %3686 = vmatprep.subr.mxu1 %v4228_v15  ;;  %v3892_v32 = vpack.c.bf16 %v2029_v30, %v2028_v31 }
 0x56b   : > { %v4059_v35 = vpop.eup %4058  ;;  %3687 = vmatpush3.msra.mxu1 %v1726_v34  ;;  %3688 = vmatprep.mubr.msk.f32.mxu1 %vm4227_vm1, %v4228_v15  ;;  %v2031_v34 = vld [vmem:[%s4914_s6 + $0x38] sm:$0xff] }
 0x56c   : > { %v1495_v36 = vmul.f32 %v4059_v35, %v4051_v20  ;;  %3879 = vmatprep.subr.bf16.mxu1 %v4226_v12  ;;  %v3895_v35 = vpack.c.bf16 %v2031_v34, %v2030_v33 }
 0x56e   : > { %3684 = vmatmul.mubr.msk.f32.vlgmr.msra.gmra.mrb[2].mxu0 %vm1136_vm2, %v1495_v36  ;;  %v2032_v36 = vld [vmem:[%s4914_s6 + $0x40] sm:$0xff] }
 0x56f   : > { %v4061_v37 = vpop.eup %4060  ;;  %3699 = vmatprep.mubr.msk.f32.mxu0 %vm4227_vm1, %v4228_v15  ;;  %3875 = vmatpush3.bf16.msra.mxu0 %v3874_v44  ;;  %v2037_v44 = vld [vmem:[%s4914_s6 + $0x68] sm:$0xff] }
 0x570   : > { %v1496_v38 = vmul.f32 %v4061_v37, %v4053_v22  ;;  %3876 = vmatprep.subr.bf16.mxu0 %v4226_v12  ;;  %v2033_v37 = vld [vmem:[%s4914_s6 + $0x48] sm:$0xff]  ;;  %v3904_v45 = vpack.c.bf16 %v2037_v44, %v2036_v42 }
 0x572   : > { %3689 = vmatmul.mubr.msk.f32.vlgmr.msra.gmra.mrb[12].mxu1 %vm1136_vm2, %v1496_v38  ;;  %v3898_v38 = vpack.c.bf16 %v2033_v37, %v2032_v36 }
 0x573   : > { %3710 = vmatprep.mubr.msk.f32.mxu1 %vm4227_vm1, %v4228_v15  ;;  %3878 = vmatpush3.bf16.msra.mxu0 %v3877_v47  ;;  %v2039_v47 = vld [vmem:[%s4914_s6 + $0x78] sm:$0xff] }
 0x574   : > { %3885 = vmatprep.subr.bf16.mxu0 %v4226_v12  ;;  %3881 = vmatpush3.bf16.msra.mxu1 %v3880_v10 }
 0x575   : > { %3882 = vmatprep.subr.bf16.mxu1 %v4226_v12 }
 0x5d8   : > { %v1569_v39 = vpop.f32.mrb[0].mxu0 }
 0x5d9   : > { %v3675_v40 = vpop.f32.mrb[1].mxu0 }
 0x5da   : > { %v2035_v40 = vld [vmem:[%s4914_s6 + $0x58] sm:$0xff] }
 0x63d   : > { %v1645_v48 = vpop.f32.mrb[10].mxu1 }
 0x63e   : > { %1802 = vrot.lane.b32.xlu0 %v1645_v48, %s4882_s26  ;;  %v3680_v49 = vpop.f32.mrb[11].mxu1  ;;  %v3907_v48 = vpack.c.bf16 %v2039_v47, %v2038_v46  ;;  %s4926_s26 = sld [smem:[#allocation17_spill]] }
 0x63f   : > { %v3504_v49 = vld [vmem:[%s4307_s30] ss:$0 sm:$0xff] }
 0x641   : > { %v1721_v50 = vpop.f32.mrb[2].mxu0 }
 0x642   : > { %1806 = vrot.lane.b32.xlu1 %v1721_v50, %s4881_s5  ;;  %v3685_v51 = vpop.f32.mrb[3].mxu0  ;;  %s4924_s5 = sld [smem:[#allocation18_spill]] }
 0x645   : > { %v1797_v52 = vpop.f32.mrb[12].mxu1 }
 0x646   : > { %1810 = vrot.lane.b32.xlu0 %v1797_v52, %s4880_s16  ;;  %v3690_v53 = vpop.f32.mrb[13].mxu1  ;;  %s4923_s16 = sld [smem:[#allocation15_spill]] }
 0x648   : > { %v2147_v8 = vld [vmem:[%s4924_s5] sm:$0xff]  ;;  %v2148_v9 = vld [vmem:[%s4924_s5 + $0x8] sm:$0xff] }
 0x649   : > { %v3910_v10 = vpack.c.bf16 %v2148_v9, %v2147_v8 }
 0x6b0   : > { %v1803_v54 = vpop.permute.xlu0 %1802 }
 0x6b1   : > { %v1813_v56 = vsel %vm1136_vm2, %v1569_v39, %v1803_v54  ;;  %v2034_v39 = vld [vmem:[%s4914_s6 + $0x50] sm:$0xff]  ;;  %s4944_s6 = sld [smem:[#allocation29_spill]] }
 0x6b2   : > { %v3901_v41 = vpack.c.bf16 %v2035_v40, %v2034_v39 }
 0x6b4   : > { %v1807_v55 = vpop.permute.xlu1 %1806 }
 0x6b5   : > { %v1815_v57 = vsel %vm1814_vm3, %v1813_v56, %v1807_v55 }
 0x6b8   : > { %v1811_v58 = vpop.permute.xlu0 %1810 }
 0x6b9   : > { %v1817_v59 = vsel %vm1816_vm4, %v1815_v57, %v1811_v58 }
 0x6ba   : > { %3700 = vmatmul.mubr.msk.f32.vlgmr.msra.gmra.mrb[4].mxu0 %vm1014_vm0, %v1817_v59  ;;  %v3507_v59 = vld [vmem:[%s4923_s16] ss:$0 sm:$0xff]  ;;  %s4925_s16 = sld [smem:[#allocation16_spill]] }
 0x6bb   : > { %3745 = vmatprep.mubr.msk.f32.mxu0 %vm4227_vm1, %v4228_v15  ;;  %3887 = vmatpush3.bf16.msra.mxu0 %v3886_v26 }
 0x6bc   : > { %3888 = vmatprep.subr.bf16.mxu0 %v4226_v12 }
 0x6bf   : > { %3890 = vmatpush3.bf16.msra.mxu0 %v3889_v29 }
 0x6c0   : > { %3891 = vmatprep.subr.bf16.mxu0 %v4226_v12 }
 0x6c3   : > { %3893 = vmatpush3.bf16.msra.mxu0 %v3892_v32 }
 0x6c4   : > { %3894 = vmatprep.subr.bf16.mxu0 %v4226_v12 }
 0x6c7   : > { %3896 = vmatpush3.bf16.msra.mxu0 %v3895_v35 }
 0x6c8   : > { %3897 = vmatprep.subr.bf16.mxu0 %v4226_v12 }
 0x6cb   : > { %3899 = vmatpush3.bf16.msra.mxu0 %v3898_v38 }
 0x6cc   : > { %3900 = vmatprep.subr.bf16.mxu0 %v4226_v12 }
 0x6cf   : > { %3902 = vmatpush3.bf16.msra.mxu0 %v3901_v41 }
 0x6d0   : > { %3903 = vmatprep.subr.bf16.mxu0 %v4226_v12 }
 0x6d3   : > { %3905 = vmatpush3.bf16.msra.mxu0 %v3904_v45 }
 0x6d4   : > { %3906 = vmatprep.subr.bf16.mxu0 %v4226_v12 }
 0x6d7   : > { %3908 = vmatpush3.bf16.msra.mxu0 %v3907_v48 }
 0x6d8   : > { %3789 = vmatprep.subr.mxu0 %v4228_v15 }
 0x78d   : > { %v1898_v61 = vpop.f32.mrb[4].mxu0 }
 0x78e   : > { %v1899_v62 = vadd.f32 %v3500_v60, %v1898_v61  ;;  %v3701_v63 = vpop.f32.mrb[5].mxu0 }
 0x790   : > { %v4591_v0 = vadd.f32 %v1899_v62, %v4464_v2  ;;  %v1934_v2 = vld [vmem:[%s4302_s24 + $0x10] sm:$0xff] }
 0x791   : > { %v3883_v13 = vpack.c.bf16 %v1935_v11, %v1934_v2  ;;  %v2150_v2 = vld [vmem:[%s4924_s5 + $0x18] sm:$0xff] }
 0x792   : > { %v1905_v1 = vsel %vm1014_vm0, %v4591_v0, 0.0 }
 0x793   : > { %1906 = vadd.xlane.f32.xlu1 %v1905_v1  ;;  %3884 = vmatpush3.bf16.msra.mxu1 %v3883_v13 }
 0x794   : > { %3909 = vmatprep.subr.bf16.mxu1 %v4226_v12 }
 0x820   : > { %v1907_v3 = vpop.xlane.xlu1 %1906 }
 0x821   : > { %v1908_v4 = vmul.f32 0.03125, %v1907_v3 }
 0x823   : > { %v1909_v5 = vsub.f32 %v4591_v0, %v1908_v4 }
 0x825   : > { %v1910_v6 = vmul.f32 %v1909_v5, %v1909_v5 }
 0x827   : > { %v1911_v7 = vsel %vm1014_vm0, %v1910_v6, 0.0 }
 0x828   : > { %1912 = vadd.xlane.f32.xlu0 %v1911_v7 }
 0x8b5   : > { %v1913_v14 = vpop.xlane.xlu0 %1912 }
 0x8b6   : > { %v1914_v16 = vmul.f32 0.03125, %v1913_v14 }
 0x8b8   : > { %v1915_v17 = vadd.f32 1e-05, %v1914_v16 }
 0x8ba   : > { %4062 = vrsqrt.f32 %v1915_v17 }
 0x8c4   : > { %v4063_v18 = vpop.eup %4062 }
 0x8c5   : > { %v1917_v20 = vmul.f32 %v4063_v18, %v1909_v5  ;;  %v3508_v18 = vld [vmem:[%s4925_s16] ss:$0 sm:$0xff]  ;;  %s4930_s16 = smov 96  }
 0x8c7   : > { %v1924_v22 = vmul.f32 %v3502_v19, %v1917_v20  ;;  %v3509_v20 = vld [vmem:[%s4926_s26] ss:$0 sm:$0xff]  ;;  %s4935_s26 = smov 16  }
 0x8c9   : > { %v1931_v23 = vadd.f32 %v3503_v21, %v1924_v22 }
 0x8cb   : > { %3711 = vmatmul.mubr.msk.f32.vlgmr.msra.gmra.mrb[14].mxu1 %vm1014_vm0, %v1931_v23  ;;  %v3510_v23 = vld [vmem:[%s4927_s10] ss:$0 sm:$0xff]  ;;  %s4932_s10 = sld [smem:[#allocation20_spill]] }
 0x8cc   : > { %3756 = vmatprep.mubr.msk.f32.mxu1 %vm4227_vm1, %v4228_v15  ;;  %3911 = vmatpush3.bf16.msra.mxu1 %v3910_v10 }
 0x8cd   : > { %3912 = vmatprep.subr.bf16.mxu1 %v4226_v12 }
 0x99e   : > { %v2012_v50 = vpop.f32.mrb[14].mxu1 }
 0x99f   : > { %v2013_v51 = vadd.f32 %v3504_v49, %v2012_v50  ;;  %v3712_v52 = vpop.f32.mrb[15].mxu1 }
 0x9a1   : > { %v3506_v53 = vmul.f32 -1.702, %v2013_v51 }
 0x9a3   : > { %v2018_v54 = vmul.f32 1.442695, %v3506_v53 }
 0x9a5   : > { %4064 = vpow2.f32 %v2018_v54 }
 0x9af   : > { %v4065_v55 = vpop.eup %4064 }
 0x9b0   : > { %v2020_v56 = vadd.f32 1.0, %v4065_v55 }
 0x9b2   : > { %4066 = vrcp.f32 %v2020_v56 }
 0x9bc   : > { %v4067_v57 = vpop.eup %4066 }
 0x9bd   : > { %v2023_v58 = vmul.f32 %v4067_v57, %v2013_v51 }
 0x9bf   : > { %3746 = vmatmul.mubr.f32.vlgmr.msra.gmra.mrb[6].mxu0 %v2023_v58 }
 0x9c0   : > { %3791 = vmatprep.mubr.msk.f32.mxu0 %vm4227_vm1, %v4228_v15 }
 0xa92   : > { %v2113_v60 = vpop.f32.mrb[6].mxu0 }
 0xa93   : > { %v2114_v61 = vadd.f32 %v3507_v59, %v2113_v60  ;;  %v3747_v62 = vpop.f32.mrb[7].mxu0 }
 0xa95   : > { %v4637_v63 = vadd.f32 %v2114_v61, %v4591_v0  ;;  %v2149_v0 = vld [vmem:[%s4924_s5 + $0x10] sm:$0xff]  ;;  %s4929_s5 = smov 104  }
 0xa96   : > { %v3913_v11 = vpack.c.bf16 %v2150_v2, %v2149_v0 }
 0xa97   : > { %v2120_v1 = vsel %vm1014_vm0, %v4637_v63, 0.0 }
 0xa98   : > { %2121 = vadd.xlane.f32.xlu0 %v2120_v1  ;;  %3914 = vmatpush3.bf16.msra.mxu1 %v3913_v11 }
 0xa99   : > { %3759 = vmatprep.subr.mxu1 %v4228_v15 }
 0xb25   : > { %v2122_v3 = vpop.xlane.xlu0 %2121 }
 0xb26   : > { %v2123_v4 = vmul.f32 0.03125, %v2122_v3 }
 0xb28   : > { %v2124_v5 = vsub.f32 %v4637_v63, %v2123_v4 }
 0xb2a   : > { %v2125_v6 = vmul.f32 %v2124_v5, %v2124_v5 }
 0xb2c   : > { %v2126_v7 = vsel %vm1014_vm0, %v2125_v6, 0.0 }
 0xb2d   : > { %2127 = vadd.xlane.f32.xlu1 %v2126_v7 }
 0xbba   : > { %v2128_v13 = vpop.xlane.xlu1 %2127 }
 0xbbb   : > { %v2129_v14 = vmul.f32 0.03125, %v2128_v13 }
 0xbbd   : > { %v2130_v16 = vadd.f32 1e-05, %v2129_v14 }
 0xbbf   : > { %4068 = vrsqrt.f32 %v2130_v16 }
 0xbc9   : > { %v4069_v17 = vpop.eup %4068 }
 0xbca   : > { %v2132_v19 = vmul.f32 %v4069_v17, %v2124_v5 }
 0xbcc   : > { %v2139_v21 = vmul.f32 %v3508_v18, %v2132_v19 }
 0xbce   : > { %v2146_v22 = vadd.f32 %v3509_v20, %v2139_v21 }
 0xbd0   : > { %3757 = vmatmul.mubr.msk.f32.vlgmr.msra.gmra.mrb[16].mxu1 %vm1014_vm0, %v2146_v22 }
 0xbd1   : > { %3761 = vmatprep.mubr.msk.f32.mxu1 %vm4227_vm1, %v4228_v15 }
 0xca3   : > { %v2227_v24 = vpop.f32.mrb[16].mxu1 }
 0xca4   : > { %v2228_v25 = vadd.f32 %v3510_v23, %v2227_v24  ;;  %v3758_v26 = vpop.f32.mrb[17].mxu1 }
 0xca6   : > { %2234 = vrot.lane.b32.xlu1 %v2228_v25, %s4231_s15  ;;  %2232 = vrot.lane.b32.xlu0 %v2228_v25, %s4928_s3  ;;  %s4931_s3 = smov 64   ;;  %s4933_s15 = smov 8  }
 0xcaa   : > { %2236 = vrot.lane.b32.xlu1 %v2228_v25, %s4929_s5  ;;  %2238 = vrot.lane.b32.xlu0 %v2228_v25, %s4930_s16  ;;  %s4934_s5 = sld [smem:[#allocation21_spill]] }
 0xd18   : > { %v4659_v27 = vpop.permute.xlu1 %2234  ;;  %v4661_v28 = vpop.permute.xlu0 %2232 }
 0xd19   : > { %2390 = vrot.lane.b32.xlu0 %v4659_v27, %s4930_s16  ;;  %2314 = vrot.lane.b32.xlu1 %v4661_v28, %s4930_s16 }
 0xd1c   : > { %v4667_v29 = vpop.permute.xlu1 %2236  ;;  %v2239_v31 = vpop.permute.xlu0 %2238 }
 0xd1d   : > { %2466 = vrot.lane.b32.xlu1 %v4667_v29, %s4930_s16  ;;  %3760 = vmatpush3.xpose.msk.msra.mxu1 %vm1136_vm2, %v2239_v31  ;;  %s4936_s16 = smov 24  }
 0xd1e   : > { %3764 = vmatprep.subr.mxu1 %v4228_v15 }
 0xd20   : > { %3762 = vmatmul.mubr.msk.f32.vlgmr.msra.gmra.mrb[18].mxu1 %vm1136_vm2, %v2228_v25 }
 0xd21   : > { %3766 = vmatprep.mubr.msk.f32.mxu1 %vm4227_vm1, %v4228_v15 }
 0xd8b   : > { %v2315_v30 = vpop.permute.xlu1 %2314  ;;  %v2391_v32 = vpop.permute.xlu0 %2390 }
 0xd8c   : > { %3765 = vmatpush3.xpose.msk.msra.mxu1 %vm1136_vm2, %v2315_v30  ;;  %v2913_v30 = vld [vmem:[%s4932_s10] sm:$0xff] }
 0xd8d   : > { %3769 = vmatprep.subr.mxu1 %v4228_v15 }
 0xd8f   : > { %3767 = vmatmul.mubr.msk.f32.vlgmr.msra.gmra.mrb[20].mxu1 %vm1136_vm2, %v4661_v28  ;;  %v2467_v33 = vpop.permute.xlu1 %2466 }
 0xd90   : > { %3770 = vmatpush3.xpose.msk.msra.mxu1 %vm1136_vm2, %v2391_v32  ;;  %3771 = vmatprep.mubr.msk.f32.mxu1 %vm4227_vm1, %v4228_v15  ;;  %v2914_v32 = vld [vmem:[%s4932_s10 + $0x8] sm:$0xff] }
 0xd91   : > { %3774 = vmatprep.subr.mxu1 %v4228_v15 }
 0xd93   : > { %3772 = vmatmul.mubr.msk.f32.vlgmr.msra.gmra.mrb[22].mxu1 %vm1136_vm2, %v4659_v27 }
 0xd94   : > { %3775 = vmatpush3.xpose.msk.msra.mxu1 %vm1136_vm2, %v2467_v33  ;;  %3776 = vmatprep.mubr.msk.f32.mxu1 %vm4227_vm1, %v4228_v15  ;;  %v3916_v33 = vpack.c.bf16 %v2914_v32, %v2913_v30 }
 0xd95   : > { %3779 = vmatprep.subr.mxu1 %v4228_v15 }
 0xd97   : > { %3777 = vmatmul.mubr.msk.f32.vlgmr.msra.gmra.mrb[24].mxu1 %vm1136_vm2, %v4667_v29 }
 0xd98   : > { %3781 = vmatprep.mubr.msk.f32.mxu1 %vm4227_vm1, %v4228_v15 }
 0xdf3   : > { %v2310_v34 = vpop.f32.mrb[18].mxu1 }
 0xdf4   : > { %v2542_v35 = vmul.f32 0.35355338, %v2310_v34  ;;  %v3763_v36 = vpop.f32.mrb[19].mxu1  ;;  %v2915_v34 = vld [vmem:[%s4932_s10 + $0x10] sm:$0xff] }
 0xdf6   : > { %v2546_v37 = vadd.f32 %v2542_v35, %v4536_v43  ;;  %v2916_v35 = vld [vmem:[%s4932_s10 + $0x18] sm:$0xff] }
 0xdf7   : > { %v3919_v36 = vpack.c.bf16 %v2916_v35, %v2915_v34 }
 0xdf8   : > { %v2550_v38 = vsel %vm1136_vm2, %v2546_v37, -inf }
 0xdf9   : > { %2551 = vmax.xlane.f32.xlu0 %v2550_v38 }
 0xe62   : > { %v2386_v39 = vpop.f32.mrb[20].mxu1 }
 0xe63   : > { %v2543_v40 = vmul.f32 0.35355338, %v2386_v39  ;;  %v3768_v41 = vpop.f32.mrb[21].mxu1 }
 0xe65   : > { %v2547_v42 = vadd.f32 %v2543_v40, %v4536_v43 }
 0xe66   : > { %v2462_v44 = vpop.f32.mrb[22].mxu1 }
 0xe67   : > { %v2544_v45 = vmul.f32 0.35355338, %v2462_v44  ;;  %v3773_v46 = vpop.f32.mrb[23].mxu1  ;;  %v2553_v47 = vsel %vm1136_vm2, %v2547_v42, -inf }
 0xe68   : > { %2554 = vmax.xlane.f32.xlu1 %v2553_v47 }
 0xe69   : > { %v2548_v48 = vadd.f32 %v2544_v45, %v4536_v43 }
 0xe6a   : > { %v2538_v49 = vpop.f32.mrb[24].mxu1 }
 0xe6b   : > { %v2545_v50 = vmul.f32 0.35355338, %v2538_v49  ;;  %v3778_v51 = vpop.f32.mrb[25].mxu1  ;;  %v2556_v52 = vsel %vm1136_vm2, %v2548_v48, -inf }
 0xe6c   : > { %2557 = vmax.xlane.f32.xlu0 %v2556_v52 }
 0xe6d   : > { %v2549_v53 = vadd.f32 %v2545_v50, %v4536_v43  ;;  %v3524_v50 = vld [vmem:[%s4934_s5] ss:$0 sm:$0xff]  ;;  %s4939_s5 = sld [smem:[#allocation23_spill]] }
 0xe6f   : > { %v2559_v54 = vsel %vm1136_vm2, %v2549_v53, -inf }
 0xe70   : > { %2560 = vmax.xlane.f32.xlu0 %v2559_v54 }
 0xe79   : > { %2594 = vrot.lane.b32.xlu1 %v2228_v25, %s4931_s3 }
 0xe86   : > { %v2552_v55 = vpop.xlane.xlu0 %2551 }
 0xe87   : > { %v2562_v56 = vsub.f32 %v2546_v37, %v2552_v55 }
 0xe89   : > { %v2566_v57 = vmul.f32 1.442695, %v2562_v56 }
 0xe8b   : > { %4070 = vpow2.f32 %v2566_v57 }
 0xe95   : > { %v4071_v58 = vpop.eup %4070 }
 0xe96   : > { %v2574_v59 = vsel %vm1136_vm2, %v4071_v58, 0.0 }
 0xe9d   : > { %2575 = vadd.xlane.f32.xlu1 %v2574_v59 }
 0xef5   : > { %v2555_v60 = vpop.xlane.xlu1 %2554 }
 0xef6   : > { %v2563_v61 = vsub.f32 %v2547_v42, %v2555_v60 }
 0xef8   : > { %v2568_v62 = vmul.f32 1.442695, %v2563_v61 }
 0xef9   : > { %v2595_v1 = vpop.permute.xlu1 %2594  ;;  %v2558_v3 = vpop.xlane.xlu0 %2557 }
 0xefa   : > { %4072 = vpow2.f32 %v2568_v62  ;;  %v2564_v43 = vsub.f32 %v2548_v48, %v2558_v3  ;;  %3780 = vmatpush3.msra.mxu1 %v2595_v1 }
 0xefb   : > { %3784 = vmatprep.subr.mxu1 %v4228_v15 }
 0xefc   : > { %v2570_v4 = vmul.f32 1.442695, %v2564_v43 }
 0xefd   : > { %v2561_v5 = vpop.xlane.xlu0 %2560 }
 0xefe   : > { %4074 = vpow2.f32 %v2570_v4  ;;  %v2565_v6 = vsub.f32 %v2549_v53, %v2561_v5 }
 0xf00   : > { %v2572_v7 = vmul.f32 1.442695, %v2565_v6 }
 0xf02   : > { %4076 = vpow2.f32 %v2572_v7 }
 0xf04   : > { %v4073_v8 = vpop.eup %4072 }
 0xf05   : > { %v2577_v9 = vsel %vm1136_vm2, %v4073_v8, 0.0 }
 0xf06   : > { %2578 = vadd.xlane.f32.xlu0 %v2577_v9 }
 0xf08   : > { %v4075_v10 = vpop.eup %4074 }
 0xf09   : > { %v2580_v0 = vsel %vm1136_vm2, %v4075_v10, 0.0 }
 0xf0a   : > { %2581 = vadd.xlane.f32.xlu1 %v2580_v0 }
 0xf0c   : > { %v4077_v2 = vpop.eup %4076 }
 0xf0d   : > { %v2583_v11 = vsel %vm1136_vm2, %v4077_v2, 0.0 }
 0xf0e   : > { %2584 = vadd.xlane.f32.xlu0 %v2583_v11 }
 0xf1b   : > { %2746 = vrot.lane.b32.xlu1 %v4659_v27, %s4931_s3 }
 0xf1f   : > { %2822 = vrot.lane.b32.xlu1 %v4667_v29, %s4931_s3 }
 0xf24   : > { %2670 = vrot.lane.b32.xlu0 %v4661_v28, %s4931_s3  ;;  %s4937_s3 = sld [smem:[#allocation24_spill]] }
 0xf2a   : > { %v2576_v13 = vpop.xlane.xlu1 %2575  ;;  %v3027_v61 = vld [vmem:[%s4937_s3] sm:$0xff]  ;;  %v3028_v62 = vld [vmem:[%s4937_s3 + $0x8] sm:$0xff]  ;;  %v3030_v3 = vld [vmem:[%s4937_s3 + $0x18] sm:$0xff] }
 0xf2b   : > { %4078 = vrcp.f32 %v2576_v13  ;;  %v3922_v1 = vpack.c.bf16 %v3028_v62, %v3027_v61  ;;  %v3234_v61 = vld [vmem:[%s4913_s4 + $0x10] sm:$0xff]  ;;  %v3235_v62 = vld [vmem:[%s4913_s4 + $0x18] sm:$0xff] }
 0xf35   : > { %v4079_v14 = vpop.eup %4078 }
 0xf36   : > { %v2590_v16 = vmul.f32 %v4079_v14, %v4071_v58 }
 0xf38   : > { %3782 = vmatmul.mubr.msk.f32.vlgmr.msra.gmra.mrb[26].mxu1 %vm1136_vm2, %v2590_v16 }
 0xf39   : > { %3786 = vmatprep.mubr.msk.f32.mxu1 %vm4227_vm1, %v4228_v15 }
 0xf93   : > { %v2579_v17 = vpop.xlane.xlu0 %2578 }
 0xf94   : > { %4080 = vrcp.f32 %v2579_v17 }
 0xf97   : > { %v2582_v18 = vpop.xlane.xlu1 %2581 }
 0xf98   : > { %4082 = vrcp.f32 %v2582_v18 }
 0xf9b   : > { %v2747_v19 = vpop.permute.xlu1 %2746  ;;  %v2585_v20 = vpop.xlane.xlu0 %2584 }
 0xf9c   : > { %4084 = vrcp.f32 %v2585_v20  ;;  %3790 = vmatpush3.msra.mxu0 %v2747_v19 }
 0xf9d   : > { %3915 = vmatprep.subr.bf16.mxu0 %v4226_v12 }
 0xf9e   : > { %v4081_v21 = vpop.eup %4080 }
 0xf9f   : > { %v2591_v22 = vmul.f32 %v4081_v21, %v4073_v8  ;;  %v2671_v23 = vpop.permute.xlu0 %2670  ;;  %v2823_v24 = vpop.permute.xlu1 %2822 }
 0xfa0   : > { %3785 = vmatpush3.msra.mxu1 %v2671_v23 }
 0xfa1   : > { %3787 = vmatmul.mubr.msk.f32.vlgmr.msra.gmra.mrb[28].mxu1 %vm1136_vm2, %v2591_v22  ;;  %3794 = vmatprep.subr.mxu1 %v4228_v15 }
 0xfa2   : > { %v4083_v25 = vpop.eup %4082  ;;  %3795 = vmatpush3.msra.mxu1 %v2823_v24  ;;  %3796 = vmatprep.mubr.msk.f32.mxu1 %vm4227_vm1, %v4228_v15 }
 0xfa3   : > { %v2592_v26 = vmul.f32 %v4083_v25, %v4075_v10  ;;  %3921 = vmatprep.subr.bf16.mxu1 %v4226_v12  ;;  %v3527_v10 = vld [vmem:[%s4939_s5] ss:$0 sm:$0xff]  ;;  %s4788_s5 = sand.u32 1, %s4184_s1  }
 0xfa4   : > { %s3320_s9 = scalar_lea.sflag [#allocation3], %s4788_s5 }
 0xfa5   : > { %3792 = vmatmul.mubr.msk.f32.vlgmr.msra.gmra.mrb[8].mxu0 %vm1136_vm2, %v2592_v26 }
 0xfa6   : > { %v4085_v27 = vpop.eup %4084  ;;  %3807 = vmatprep.mubr.msk.f32.mxu0 %vm4227_vm1, %v4228_v15  ;;  %3917 = vmatpush3.bf16.msra.mxu0 %v3916_v33 }
 0xfa7   : > { %v2593_v28 = vmul.f32 %v4085_v27, %v4077_v2  ;;  %3918 = vmatprep.subr.bf16.mxu0 %v4226_v12 }
 0xfa9   : > { %3797 = vmatmul.mubr.msk.f32.vlgmr.msra.gmra.mrb[30].mxu1 %vm1136_vm2, %v2593_v28 }
 0xfaa   : > { %3818 = vmatprep.mubr.msk.f32.mxu1 %vm4227_vm1, %v4228_v15  ;;  %3920 = vmatpush3.bf16.msra.mxu0 %v3919_v36 }
 0xfab   : > { %3927 = vmatprep.subr.bf16.mxu0 %v4226_v12  ;;  %3923 = vmatpush3.bf16.msra.mxu1 %v3922_v1  ;;  %v3955_v1 = vpack.c.bf16 %v3235_v62, %v3234_v61 }
 0xfac   : > { %3924 = vmatprep.subr.bf16.mxu1 %v4226_v12 }
0x100b   : > { %v2666_v29 = vpop.f32.mrb[26].mxu1 }
0x100c   : > { %v3783_v31 = vpop.f32.mrb[27].mxu1 }
0x1074   : > { %v2742_v37 = vpop.f32.mrb[28].mxu1 }
0x1075   : > { %2899 = vrot.lane.b32.xlu0 %v2742_v37, %s4933_s15  ;;  %v3788_v38 = vpop.f32.mrb[29].mxu1  ;;  %s4938_s15 = sld [smem:[#allocation22_spill]] }
0x1078   : > { %v2818_v39 = vpop.f32.mrb[8].mxu0 }
0x1079   : > { %2903 = vrot.lane.b32.xlu1 %v2818_v39, %s4935_s26  ;;  %v3793_v40 = vpop.f32.mrb[9].mxu0  ;;  %s4940_s26 = sld [smem:[#allocation26_spill]] }
0x107b   : > { %v3526_v8 = vld [vmem:[%s4938_s15] ss:$0 sm:$0xff]  ;;  %s4942_s15 = sld [smem:[#allocation27_spill]] }
0x107c   : > { %v2894_v41 = vpop.f32.mrb[30].mxu1 }
0x107d   : > { %2907 = vrot.lane.b32.xlu0 %v2894_v41, %s4936_s16  ;;  %v3798_v42 = vpop.f32.mrb[31].mxu1  ;;  %s4941_s16 = sld [smem:[#allocation25_spill]] }
0x107f   : > { %v3119_v11 = vld [vmem:[%s4940_s26] sm:$0xff]  ;;  %v3120_v13 = vld [vmem:[%s4940_s26 + $0x8] sm:$0xff]  ;;  %v3121_v16 = vld [vmem:[%s4940_s26 + $0x10] sm:$0xff] }
0x1080   : > { %v3928_v14 = vpack.c.bf16 %v3120_v13, %v3119_v11  ;;  %v3122_v17 = vld [vmem:[%s4940_s26 + $0x18] sm:$0xff]  ;;  %v3123_v19 = vld [vmem:[%s4940_s26 + $0x20] sm:$0xff]  ;;  %v3125_v21 = vld [vmem:[%s4940_s26 + $0x30] sm:$0xff] }
0x1081   : > { %v3931_v18 = vpack.c.bf16 %v3122_v17, %v3121_v16  ;;  %v3126_v22 = vld [vmem:[%s4940_s26 + $0x38] sm:$0xff]  ;;  %v3127_v24 = vld [vmem:[%s4940_s26 + $0x40] sm:$0xff]  ;;  %v3128_v25 = vld [vmem:[%s4940_s26 + $0x48] sm:$0xff] }
0x1082   : > { %v3937_v23 = vpack.c.bf16 %v3126_v22, %v3125_v21  ;;  %v3940_v26 = vpack.c.bf16 %v3128_v25, %v3127_v24  ;;  %v3129_v27 = vld [vmem:[%s4940_s26 + $0x50] sm:$0xff]  ;;  %v3130_v28 = vld [vmem:[%s4940_s26 + $0x58] sm:$0xff]  ;;  %v3131_v31 = vld [vmem:[%s4940_s26 + $0x60] sm:$0xff] }
0x1083   : > { %v3132_v30 = vld [vmem:[%s4940_s26 + $0x68] sm:$0xff]  ;;  %v3133_v33 = vld [vmem:[%s4940_s26 + $0x70] sm:$0xff]  ;;  %v3134_v34 = vld [vmem:[%s4940_s26 + $0x78] sm:$0xff] }
0x1084   : > { %v3946_v32 = vpack.c.bf16 %v3132_v30, %v3131_v31  ;;  %v3949_v35 = vpack.c.bf16 %v3134_v34, %v3133_v33  ;;  %v3528_v36 = vld [vmem:[%s4941_s16] ss:$0 sm:$0xff] }
0x10e7   : > { %v2900_v44 = vpop.permute.xlu0 %2899 }
0x10e8   : > { %v2910_v46 = vsel %vm1136_vm2, %v2666_v29, %v2900_v44  ;;  %v3943_v29 = vpack.c.bf16 %v3130_v28, %v3129_v27 }
0x10eb   : > { %v2904_v45 = vpop.permute.xlu1 %2903 }
0x10ec   : > { %v2911_v47 = vsel %vm1814_vm3, %v2910_v46, %v2904_v45 }
0x10ef   : > { %v2908_v48 = vpop.permute.xlu0 %2907 }
0x10f0   : > { %v2912_v49 = vsel %vm1816_vm4, %v2911_v47, %v2908_v48  ;;  %v3531_v47 = vld [vmem:[%s4942_s15] ss:$0 sm:$0xff]  ;;  %s4943_s15 = sld [smem:[#allocation28_spill]] }
0x10f1   : > { %3808 = vmatmul.mubr.msk.f32.vlgmr.msra.gmra.mrb[10].mxu0 %vm1014_vm0, %v2912_v49 }
0x10f2   : > { %3853 = vmatprep.mubr.msk.f32.mxu0 %vm4227_vm1, %v4228_v15  ;;  %3929 = vmatpush3.bf16.msra.mxu0 %v3928_v14 }
0x10f3   : > { %3930 = vmatprep.subr.bf16.mxu0 %v4226_v12 }
0x10f6   : > { %3932 = vmatpush3.bf16.msra.mxu0 %v3931_v18 }
0x10f7   : > { %3933 = vmatprep.subr.bf16.mxu0 %v4226_v12 }
0x11c4   : > { %v2993_v51 = vpop.f32.mrb[10].mxu0 }
0x11c5   : > { %v2994_v52 = vadd.f32 %v3524_v50, %v2993_v51  ;;  %v3809_v53 = vpop.f32.mrb[11].mxu0 }
0x11c7   : > { %v4746_v54 = vadd.f32 %v2994_v52, %v4637_v63  ;;  %v3029_v63 = vld [vmem:[%s4937_s3 + $0x10] sm:$0xff]  ;;  %s3482_s3 = sshll.u32 %s4788_s5, 3 }
0x11c8   : > { %v3925_v43 = vpack.c.bf16 %v3030_v3, %v3029_v63  ;;  %s4794_s16 = scalar_lea.vmem [#allocation2], %s3482_s3  ;;  %s3535_s3 = sshll.u32 %s4430_s0, 7 }
0x11c9   : > { %v3000_v55 = vsel %vm1014_vm0, %v4746_v54, 0.0  ;;  %s4809_s8 = scalar_lea.hbm %s4402_s20, %s3535_s3 }
0x11ca   : > { %3001 = vadd.xlane.f32.xlu1 %v3000_v55  ;;  %3926 = vmatpush3.bf16.msra.mxu1 %v3925_v43 }
0x11cb   : > { %3951 = vmatprep.subr.bf16.mxu1 %v4226_v12 }
0x1257   : > { %v3002_v56 = vpop.xlane.xlu1 %3001 }
0x1258   : > { %v3003_v57 = vmul.f32 0.03125, %v3002_v56 }
0x125a   : > { %v3004_v58 = vsub.f32 %v4746_v54, %v3003_v57 }
0x125c   : > { %v3005_v59 = vmul.f32 %v3004_v58, %v3004_v58 }
0x125e   : > { %v3006_v60 = vsel %vm1014_vm0, %v3005_v59, 0.0  ;;  %v3232_v59 = vld [vmem:[%s4913_s4] sm:$0xff] }
0x125f   : > { %3007 = vadd.xlane.f32.xlu0 %v3006_v60 }
0x12ec   : > { %v3008_v4 = vpop.xlane.xlu0 %3007 }
0x12ed   : > { %v3009_v5 = vmul.f32 0.03125, %v3008_v4 }
0x12ef   : > { %v3010_v6 = vadd.f32 1e-05, %v3009_v5  ;;  %v3214_v5 = vld [vmem:[%s4943_s15] sm:$0x1]  ;;  %s4104_s15 = scalar_lea.vmem %s4103_s14, 256 }
0x12f1   : > { %4086 = vrsqrt.f32 %v3010_v6 }
0x12fb   : > { %v4087_v7 = vpop.eup %4086 }
0x12fc   : > { %v3012_v9 = vmul.f32 %v4087_v7, %v3004_v58  ;;  %v3215_v7 = vld [vmem:[%s4944_s6] sm:$0x1] }
0x12fe   : > { %v3019_v0 = vmul.f32 %v3526_v8, %v3012_v9 }
0x1300   : > { %v3026_v2 = vadd.f32 %v3527_v10, %v3019_v0 }
0x1302   : > { %3819 = vmatmul.mubr.msk.f32.vlgmr.msra.gmra.mrb[32].mxu1 %vm1014_vm0, %v3026_v2 }
0x1303   : > { %3864 = vmatprep.mubr.msk.f32.mxu1 %vm4227_vm1, %v4228_v15  ;;  %v3124_v15 = vld [vmem:[%s4940_s26 + $0x28] sm:$0xff] }
0x1304   : > { %v3934_v20 = vpack.c.bf16 %v3124_v15, %v3123_v19 }
0x1306   : > { %3935 = vmatpush3.bf16.msra.mxu0 %v3934_v20 }
0x1307   : > { %3936 = vmatprep.subr.bf16.mxu0 %v4226_v12 }
0x130a   : > { %3938 = vmatpush3.bf16.msra.mxu0 %v3937_v23 }
0x130b   : > { %3939 = vmatprep.subr.bf16.mxu0 %v4226_v12 }
0x130e   : > { %3941 = vmatpush3.bf16.msra.mxu0 %v3940_v26 }
0x130f   : > { %3942 = vmatprep.subr.bf16.mxu0 %v4226_v12 }
0x1312   : > { %3944 = vmatpush3.bf16.msra.mxu0 %v3943_v29 }
0x1313   : > { %3945 = vmatprep.subr.bf16.mxu0 %v4226_v12 }
0x1316   : > { %3947 = vmatpush3.bf16.msra.mxu0 %v3946_v32 }
0x1317   : > { %3948 = vmatprep.subr.bf16.mxu0 %v4226_v12 }
0x131a   : > { %3950 = vmatpush3.bf16.msra.mxu0 %v3949_v35 }
0x13d5   : > { %v3107_v37 = vpop.f32.mrb[32].mxu1 }
0x13d6   : > { %v3108_v38 = vadd.f32 %v3528_v36, %v3107_v37  ;;  %v3820_v39 = vpop.f32.mrb[33].mxu1 }
0x13d8   : > { %v3530_v40 = vmul.f32 -1.702, %v3108_v38 }
0x13da   : > { %v3113_v41 = vmul.f32 1.442695, %v3530_v40 }
0x13dc   : > { %4088 = vpow2.f32 %v3113_v41 }
0x13e6   : > { %v4089_v42 = vpop.eup %4088 }
0x13e7   : > { %v3115_v44 = vadd.f32 1.0, %v4089_v42 }
0x13e9   : > { %4090 = vrcp.f32 %v3115_v44 }
0x13f3   : > { %v4091_v45 = vpop.eup %4090 }
0x13f4   : > { %v3118_v46 = vmul.f32 %v4091_v45, %v3108_v38 }
0x13f6   : > { %3854 = vmatmul.mubr.f32.vlgmr.msra.gmra.mrb[12].mxu0 %v3118_v46 }
0x14c9   : > { %v3208_v48 = vpop.f32.mrb[12].mxu0 }
0x14ca   : > { %v3209_v49 = vadd.f32 %v3531_v47, %v3208_v48  ;;  %v3855_v50 = vpop.f32.mrb[13].mxu0 }
0x14cc   : > { %v3212_v51 = vadd.f32 %v3209_v49, %v4746_v54  ;;  %v3233_v54 = vld [vmem:[%s4913_s4 + $0x8] sm:$0xff]  ;;  %s3337_s4 = sshll.u32 %s4794_s16, 4  ;;  %s3338_s4 = int_to_ptr.vmem [resolvable:$true] %s3337_s4 }
0x14cd   : > { %v3952_v60 = vpack.c.bf16 %v3233_v54, %v3232_v59  ;;  %s4098_s10 = scalar_lea.vmem %s3338_s4, 128  ;;  %p4105_p0 = scmp.lt.s32.totalorder %s3338_s4, %s4103_s14 }
0x14ce   : > { %v3217_v52 = vsel %vm3216_vm5, %v3212_v51, 0.0  ;;  %3213 = vst.msk [vmem:[%s4794_s16] sm:$0xff] %vm1014_vm0, %v3212_v51  ;;  %p4099_p11 = scmp.ne.s32.totalorder %s3338_s4, %s4098_s10  ;;  %p4106_p1 = scmp.lt.s32.totalorder %s4104_s15, %s4098_s10 }
0x14cf   : > { %3218 = vadd.xlane.f32.xlu0 %v3217_v52  ;;  %3953 = vmatpush3.bf16.msra.mxu1 %v3952_v60 }
0x14d0   : > { %3954 = vmatprep.subr.bf16.mxu1 %v4226_v12  ;;  %p4100_p12 = pnand %p4099_p11, %p4447_p5  ;;  %p4107_p2 = por %p4106_p1, %p4105_p0 }
0x14d2   : > { %p4101_p13 = pneg %p4100_p12 }
0x14d3   : > { %3956 = vmatpush3.bf16.msra.mxu1 %v3955_v1 }
0x14d4   : > { %p4108_p3 = pnand %p4107_p2, %p4101_p13 }
0x155c   : > { %v3219_v53 = vpop.xlane.xlu0 %3218 }
0x155d   : > { %v3220_v55 = vmul.f32 0.03125, %v3219_v53 }
0x155f   : > { %v3221_v56 = vsub.f32 %v3212_v51, %v3220_v55 }
0x1561   : > { %v3222_v57 = vmul.f32 %v3221_v56, %v3221_v56 }
0x1563   : > { %v3223_v58 = vsel %vm3216_vm5, %v3222_v57, 0.0 }
0x1564   : > { %3224 = vadd.xlane.f32.xlu1 %v3223_v58 }
0x15f1   : > { %v3225_v63 = vpop.xlane.xlu1 %3224 }
0x15f2   : > { %v3226_v3 = vmul.f32 0.03125, %v3225_v63 }
0x15f4   : > { %v3227_v43 = vadd.f32 1e-05, %v3226_v3 }
0x15f6   : > { %4092 = vrsqrt.f32 %v3227_v43 }
0x1600   : > { %v4093_v4 = vpop.eup %4092 }
0x1601   : > { %v3229_v6 = vmul.f32 %v4093_v4, %v3221_v56 }
0x1603   : > { %v3230_v8 = vmul.f32 %v3229_v6, %v3214_v5 }
0x1605   : > { %v3231_v9 = vadd.f32 %v3230_v8, %v3215_v7 }
0x1607   : > { %3865 = vmatmul.mubr.msk.f32.vlgmr.msra.gmra.mrb[34].mxu1 %vm1014_vm0, %v3231_v9 }
0x1608   : > { %4111 = shalt.err (!%p4108_p3)
}
0x1609   : > { %s4112_s6 = scalar_lea.hbm %s4809_s8, 128  ;;  %s4116_s13 = scalar_lea.hbm %s4402_s20, 256 }
0x160a   : > { %p4113_p4 = scmp.ne.s32.totalorder %s4809_s8, %s4112_s6  ;;  %p4117_p9 = scmp.lt.u32.totalorder %s4809_s8, %s4402_s20 }
0x160b   : > { %p4118_p10 = scmp.lt.u32.totalorder %s4116_s13, %s4112_s6  ;;  %p4120_p12 = scmp.lt.u32.totalorder %s4112_s6, %s4809_s8 }
0x160c   : > { %p4114_p7 = pnand %p4113_p4, %p4447_p5 }
0x160d   : > { %p4119_p11 = por %p4118_p10, %p4117_p9 }
0x160e   : > { %p4115_p8 = pneg %p4114_p7 }
0x160f   : > { %p4121_p0 = por %p4120_p12, %p4119_p11 }
0x1611   : > { %p4122_p13 = pnand %p4121_p0, %p4115_p8 }
0x1613   : > { %4125 = shalt.err (!%p4122_p13)
}
0x1614   : > { %3957 = dma.vmem_to_hbm [thread:$0]  (%p4447_p5), %s3338_s4, 128, %s4809_s8, %s3320_s9   ;;  %v3236_v12 = vld [vmem:[%s4397_s12] sm:$0x1] }
0x1615   : > { %s3536_s14 = sshll.u32 %s4430_s0, 4  ;;  %s998_s10 = scalar_lea.vmem [#allocation4], %s4788_s5 }
0x1616   : > { %s3350_s16 = sshll.u32 %s998_s10, 4  ;;  %s4830_s3 = scalar_lea.hbm %s4407_s27, %s3536_s14  ;;  %s4832_s16 = int_to_ptr.vmem [resolvable:$true] %s3350_s16 }
0x1617   : > { %s3325_s9 = scalar_lea.sflag [#allocation5], %s4788_s5  ;;  %s4126_s8 = scalar_lea.vmem %s4832_s16, 16 }
0x1618   : > { %p4127_p1 = scmp.ne.s32.totalorder %s4832_s16, %s4126_s8  ;;  %s4238_s4 = smov [#allocation4]  }
0x1619   : > { %s4130_s0 = sshll.u32 %s4238_s4, 4  ;;  %s4131_s0 = int_to_ptr.vmem [resolvable:$false] %s4130_s0 }
0x161a   : > { %p4128_p2 = pnand %p4127_p1, %p4447_p5  ;;  %s4132_s15 = scalar_lea.vmem %s4131_s0, 32 }
0x161b   : > { %p4133_p4 = scmp.lt.s32.totalorder %s4832_s16, %s4131_s0  ;;  %p4134_p7 = scmp.lt.s32.totalorder %s4132_s15, %s4126_s8 }
0x161c   : > { %p4129_p3 = pneg %p4128_p2 }
0x161d   : > { %p4135_p8 = por %p4134_p7, %p4133_p4 }
0x161f   : > { %p4136_p9 = pnand %p4135_p8, %p4129_p3 }
0x16da   : > { %v3306_v10 = vpop.f32.mrb[34].mxu1 }
0x16db   : > { %v3307_v0 = vadd.f32 %v3306_v10, %v3236_v12  ;;  %v3866_v2 = vpop.f32.mrb[35].mxu1 }
0x16dd   : > { %v3533_v11 = vmul.f32 -1.702, %v3307_v0 }
0x16df   : > { %v3312_v13 = vmul.f32 1.442695, %v3533_v11 }
0x16e1   : > { %4094 = vpow2.f32 %v3312_v13 }
0x16eb   : > { %v4095_v14 = vpop.eup %4094 }
0x16ec   : > { %v3314_v16 = vadd.f32 1.0, %v4095_v14 }
0x16ee   : > { %4096 = vrcp.f32 %v3314_v16 }
0x16f8   : > { %v4097_v17 = vpop.eup %4096 }
0x16f9   : > { %v3317_v18 = vmul.f32 %v4097_v17, %v3307_v0 }
0x16fb   : > { %3318 = vst.msk [vmem:[%s998_s10] sm:$0x1] %vm3216_vm5, %v3317_v18 }
0x16fc   : > { %4139 = shalt.err (!%p4136_p9)
}
0x16fd   : > { %s4140_s5 = scalar_lea.hbm %s4830_s3, 16  ;;  %s4144_s6 = scalar_lea.hbm %s4407_s27, 32 }
0x16fe   : > { %p4141_p10 = scmp.ne.s32.totalorder %s4830_s3, %s4140_s5  ;;  %p4145_p0 = scmp.lt.u32.totalorder %s4830_s3, %s4407_s27 }
0x16ff   : > { %p4146_p13 = scmp.lt.u32.totalorder %s4144_s6, %s4140_s5  ;;  %p4148_p2 = scmp.lt.u32.totalorder %s4140_s5, %s4830_s3 }
0x1700   : > { %p4142_p11 = pnand %p4141_p10, %p4447_p5 }
0x1701   : > { %p4147_p1 = por %p4146_p13, %p4145_p0 }
0x1702   : > { %p4143_p12 = pneg %p4142_p11 }
0x1703   : > { %p4149_p4 = por %p4148_p2, %p4147_p1 }
0x1705   : > { %p4150_p3 = pnand %p4149_p4, %p4143_p12 }
0x1707   : > { %4153 = shalt.err (!%p4150_p3)
}
0x1708   : > { %3958 = dma.vmem_to_hbm [thread:$0]  (%p4447_p5), %s4832_s16, 16, %s4830_s3, %s3325_s9  }
0x1709 PF: > { %p3968_p7 = scmp.ge.s32.totalorder %s4192_s7, 2  ;;  %s3362_s13 = sand.u32 1, %s4180_s28  }
0x170a   : > { %s3363_s14 = scalar_lea.sflag [#allocation3], %s3362_s13 }
0x170b   : > { %p3962_p8 = pnand %p3968_p7, %p4451_p6 }
0x170d   : > { %4171 = dma.done.wait (!%p3962_p8), %s3363_s14, 128  }
0x170e   : > { %4173 = vsyncadd (!%p3962_p8), %s3363_s14, 4294967168  ;;  %s3372_s10 = scalar_lea.sflag [#allocation5], %s3362_s13 }
0x170f   : > { %4175 = dma.done.wait (!%p3962_p8), %s3372_s10, 16  }
0x1710   : > { %4177 = vsyncadd (!%p3962_p8), %s3372_s10, 4294967280  ;;  %p79_p5 = scmp.ge.s32.totalorder %s4434_s11, 4   ;;  %s4945_s28 = smov %s4184_s1 }
0x1711   : > { %s4946_s1 = smov %s4188_s2  ;;  %s4947_s2 = smov %s4445_s18 }
0x1712   : > { %s4948_s7 = smov %s4434_s11  ;;  %81 = sbr.rel (!%p79_p5) target bundleno = 69 (0x45), region = 231 }
0x1719   :  { %3376 = vsyncpa [#allocation3], 1 }
0x171a   :  { %3378 = vsyncpa [#allocation3 + $0x1], 1 }
0x171b   :  { %3379 = vsyncpa [#allocation5], 1 }
0x171c   :  { %3381 = vsyncpa [#allocation5 + $0x1], 1 }

</bundles_post_ra>
